<compile_context>
chip_gen: v7x
topology: tpu7x:2x2x1
jax: 0.10.0
libtpu: 0.0.40
codegen_flags: <defaults>
</compile_context>

<pallas_src>
import functools
import math

import jax
import jax.numpy as jnp
from jax.experimental import pallas as pl
from jax.experimental.pallas import tpu as pltpu


_GELU_C = 0.7978845608028654  # sqrt(2/pi)


def _gelu(x):
    # tanh-form GELU: the transcendental lands on the EUP slot instead of a
    # long VALU chain.  torch.nn.GELU() default is the exact erf form; the
    # deviation is <~1e-3, below the bf16 rounding applied to the MXU inputs.
    # TODO(synk): switch to exact erf GELU if bit-level parity with PyTorch is required.
    return 0.5 * x * (1.0 + jnp.tanh(_GELU_C * (x + 0.044715 * x * x * x)))


def _round_up(x, m):
    return (x + m - 1) // m * m


def _vmem_limit(block_bytes):
    # Generous double-buffer + scratch margin, clamped so the limit is valid on
    # every TPU generation's scoped-VMEM ceiling (16/32/32 MiB defaults,
    # 128/128/64 MiB physical).
    return int(min(max(4 * block_bytes + (2 << 20), 4 << 20), 32 << 20))


# ----------------------------- Pallas kernels ------------------------------ #

def _dsconv_kernel(s_ref, w_ref, b_ref, o_ref, *, wf):
    """Conv2d(k=4, s=2, p=1) + GELU for one batch element.

    s_ref : (1, Mpad, 4*Cin) bf16  flattened space-to-depth input (row width = wf)
    w_ref : (4, 4*Cin, Cout) bf16  one (4*Cin, Cout) matrix per 2x2 shift
    b_ref : (1, Cout)        f32
    o_ref : (1, Ho*wf, Cout) bf16  output over the wf-wide (padded) column grid
    """
    mo = o_ref.shape[1]
    cout = o_ref.shape[2]
    acc = jnp.zeros((mo, cout), jnp.float32)
    # shift index k = 2*ph + pw  ->  row offset ph*wf + pw in the flat image.
    for k, off in enumerate((0, 1, wf, wf + 1)):
        lhs = s_ref[0, pl.ds(off, mo), :]                    # already bf16
        acc = acc + jnp.dot(lhs, w_ref[k], preferred_element_type=jnp.float32)
    o_ref[0] = _gelu(acc + b_ref[...]).astype(o_ref.dtype)


def _res_prequant_kernel(h_ref, wr_ref, br_ref, wpq_ref, bpq_ref, o_ref):
    """Two ResidualAdd(GELU->1x1->GELU->1x1) blocks + pre_quantization
    (GELU->1x1), fully fused: the (tm, C) activation tile never leaves VMEM."""
    h = h_ref[...].astype(jnp.float32)                       # (tm, C) skip in f32
    for blk in range(2):                                     # two ResidualAdd blocks
        t = jnp.dot(_gelu(h).astype(jnp.bfloat16), wr_ref[2 * blk],
                    preferred_element_type=jnp.float32) + br_ref[2 * blk]
        t = jnp.dot(_gelu(t).astype(jnp.bfloat16), wr_ref[2 * blk + 1],
                    preferred_element_type=jnp.float32) + br_ref[2 * blk + 1]
        h = h + t                                            # ResidualAdd skip
    o = jnp.dot(_gelu(h).astype(jnp.bfloat16), wpq_ref[...],
                preferred_element_type=jnp.float32) + bpq_ref[...]
    o_ref[...] = o.astype(o_ref.dtype)


# ------------------------------ kernel wrappers ----------------------------- #

def conv4x4_s2_gelu(x_nhwc, w4, b):
    """4x4 / stride-2 / pad-1 conv + GELU.  (N, H, W, Cin) -> (N, Ho, Wo, Cout)."""
    n, h, w, c = x_nhwc.shape
    ho, wo = h // 2, w // 2
    hp, wp = _round_up(h + 2, 2), _round_up(w + 2, 2)        # zero-pad, even for s2d
    hs, ws = hp // 2, wp // 2
    wf = ws                                                  # flat row width (>= wo+1)
    mo = ho * wf
    c4, cout = 4 * c, w4.shape[-1]

    xp = jnp.pad(x_nhwc.astype(jnp.bfloat16),
                 ((0, 0), (1, hp - h - 1), (1, wp - w - 1), (0, 0)))
    s2d = (xp.reshape(n, hs, 2, ws, 2, c)
             .transpose(0, 1, 3, 2, 4, 5)
             .reshape(n, hs * ws, c4))                       # channels = (sh, sw, cin)
    mpad = _round_up(max(hs * wf, mo + wf + 2), 8)
    s_flat = jnp.pad(s2d, ((0, 0), (0, mpad - hs * wf), (0, 0)))   # bf16 in HBM

    blk_bytes = mpad * c4 * 2 + 4 * c4 * cout * 2 + cout * 4 + mo * cout * 2
    out = pl.pallas_call(
        functools.partial(_dsconv_kernel, wf=wf),
        out_shape=jax.ShapeDtypeStruct((n, mo, cout), jnp.bfloat16),
        grid=(n,),
        in_specs=[
            pl.BlockSpec((1, mpad, c4), lambda i: (i, 0, 0)),
            pl.BlockSpec((4, c4, cout), lambda i: (0, 0, 0)),   # VMEM-resident weights
            pl.BlockSpec((1, cout), lambda i: (0, 0)),
        ],
        out_specs=pl.BlockSpec((1, mo, cout), lambda i: (i, 0, 0)),
        compiler_params=pltpu.CompilerParams(
            dimension_semantics=("parallel",),                  # batch across cores
            vmem_limit_bytes=_vmem_limit(blk_bytes),
        ),
    )(s_flat, w4, b)
    # Drop the (wf - wo) garbage columns introduced by the flattened-shift trick.
    return out.reshape(n, ho, wf, cout)[:, :, :wo, :]


def residual_prequant(hflat, wr, br, wpq, bpq, *, tm_max=512):
    """Fused 2x ResidualAdd + pre_quantization over the flattened activation."""
    m, c = hflat.shape
    latent = wpq.shape[-1]
    mp = _round_up(m, 8)
    if mp != m:
        hflat = jnp.pad(hflat, ((0, mp - m), (0, 0)))
    tm = min(mp, tm_max)                                     # M-tiled, pipelined grid
    grid = (pl.cdiv(mp, tm),)

    blk_bytes = (tm * c * 2 + 4 * c * c * 2 + 4 * c * 4
                 + c * latent * 2 + latent * 4 + tm * latent * 4)
    out = pl.pallas_call(
        _res_prequant_kernel,
        out_shape=jax.ShapeDtypeStruct((mp, latent), jnp.float32),
        grid=grid,
        in_specs=[
            pl.BlockSpec((tm, c), lambda i: (i, 0)),
            pl.BlockSpec((4, c, c), lambda i: (0, 0, 0)),       # 4x (C,C) resident
            pl.BlockSpec((4, 1, c), lambda i: (0, 0, 0)),
            pl.BlockSpec((c, latent), lambda i: (0, 0)),        # pre-quant weight
            pl.BlockSpec((1, latent), lambda i: (0, 0)),
        ],
        out_specs=pl.BlockSpec((tm, latent), lambda i: (i, 0)),  # lane-dense (128)
        compiler_params=pltpu.CompilerParams(
            dimension_semantics=("parallel",),
            vmem_limit_bytes=_vmem_limit(blk_bytes),
        ),
    )(hflat.astype(jnp.bfloat16), wr, br, wpq, bpq)
    return out[:m]


# ------------------------------ params & forward ---------------------------- #

def _uniform(key, shape, bound):
    return jax.random.uniform(key, shape, jnp.float32, -bound, bound)


def init_encoder_params(key, input_channels, hidden_dims=(32, 64), latent_dim=128):
    """PyTorch-style Conv2d init (uniform +-1/sqrt(fan_in)), in kernel layouts."""
    params = {"down": []}
    cin = input_channels
    for l in hidden_dims:
        key, kw_, kb_ = jax.random.split(key, 3)
        bound = 1.0 / math.sqrt(cin * 16)
        w_pt = _uniform(kw_, (l, cin, 4, 4), bound)            # (cout, cin, kh, kw)
        b = _uniform(kb_, (l,), bound)
        # kh=2*ph+sh, kw=2*pw+sw:  -> (ph, pw, sh, sw, cin, cout) -> (4, 4*cin, cout)
        w4 = (w_pt.reshape(l, cin, 2, 2, 2, 2)
                  .transpose(2, 4, 3, 5, 1, 0)
                  .reshape(4, 4 * cin, l))
        params["down"].append((w4.astype(jnp.bfloat16), b.reshape(1, l)))
        cin = l

    c = hidden_dims[-1]
    ws_, bs_ = [], []
    for _ in range(4):                                         # 2 ResidualAdd x 2 conv1x1
        key, kw_, kb_ = jax.random.split(key, 3)
        bound = 1.0 / math.sqrt(c)
        w_pt = _uniform(kw_, (c, c, 1, 1), bound)
        ws_.append(w_pt.reshape(c, c).T)                       # (cin, cout)
        bs_.append(_uniform(kb_, (c,), bound).reshape(1, c))
    params["res_w"] = jnp.stack(ws_).astype(jnp.bfloat16)      # (4, c, c)
    params["res_b"] = jnp.stack(bs_)                           # (4, 1, c) f32

    key, kw_, kb_ = jax.random.split(key, 3)
    bound = 1.0 / math.sqrt(c)
    w_pt = _uniform(kw_, (latent_dim, c, 1, 1), bound)
    params["pre_w"] = w_pt.reshape(latent_dim, c).T.astype(jnp.bfloat16)  # (c, latent)
    params["pre_b"] = _uniform(kb_, (latent_dim,), bound).reshape(1, latent_dim)
    return params


def encoder_forward(x_nchw, params):
    # NCHW (PyTorch convention) -> NHWC for the kernels.
    x = jnp.transpose(x_nchw, (0, 2, 3, 1))

    # downsample: [Conv2d(4, s=2, p=1) + GELU] per hidden dim — one kernel each.
    for w4, b in params["down"]:
        x = conv4x4_s2_gelu(x, w4, b)

    # 2x ResidualAdd + pre_quantization — one fused kernel.
    n, h, w, c = x.shape
    hflat = x.reshape(n * h * w, c)
    out = residual_prequant(hflat, params["res_w"], params["res_b"],
                            params["pre_w"], params["pre_b"])
    out = out.reshape(n, h, w, -1)
    return jnp.transpose(out, (0, 3, 1, 2))                   # back to NCHW


if __name__ == "__main__":
    key = jax.random.PRNGKey(0)
    k_x, k_p = jax.random.split(key)

    batch, input_channels, img_size = 2, 3, 16
    hidden_dims, latent_dim = (32, 64), 128

    x = jax.random.normal(k_x, (batch, input_channels, img_size, img_size), jnp.float32)
    params = init_encoder_params(k_p, input_channels, hidden_dims, latent_dim)

    out = jax.jit(encoder_forward)(x, params)
    out = jax.block_until_ready(out)

    expected = (batch, latent_dim, img_size // 4, img_size // 4)  # 16 -> 8 -> 4
    assert out.shape == expected, (out.shape, expected)
    assert bool(jnp.all(jnp.isfinite(out)))
    print("KERNEL_OK")
</pallas_src>

<mosaic_0001>
module attributes {stable_mosaic.version = 11 : i64} {
  func.func @_dsconv_kernel(%arg0: i32, %arg1: memref<1x88x12xbf16, #tpu.memory_space<vmem>>, %arg2: memref<4x12x32xbf16, #tpu.memory_space<vmem>>, %arg3: memref<1x32xf32, #tpu.memory_space<vmem>>, %arg4: memref<1x72x32xbf16, #tpu.memory_space<vmem>>) attributes {dimension_semantics = [#tpu.dimension_semantics<parallel>], iteration_bounds = array<i64: 2>, scalar_prefetch = 0 : i64, scratch_operands = 0 : i64, tpu.core_type = #tpu.core_type<tc>, window_params = [{transform_indices = @transform_0, window_bounds = array<i64: 1, 88, 12>}, {pipeline_mode = #tpu.pipeline_mode<synchronous>, transform_indices = @transform_1, window_bounds = array<i64: 4, 12, 32>}, {pipeline_mode = #tpu.pipeline_mode<synchronous>, transform_indices = @transform_2, window_bounds = array<i64: 1, 32>}, {transform_indices = @transform_3, window_bounds = array<i64: 1, 72, 32>}]} {
    %cst = arith.constant 0.000000e+00 : f32
    %0 = vector.broadcast %cst : f32 to vector<72x32xf32>
    %c0 = arith.constant 0 : index
    %c0_0 = arith.constant 0 : index
    %c0_1 = arith.constant 0 : index
    %1 = vector.load %arg1[%c0, %c0_0, %c0_1] : memref<1x88x12xbf16, #tpu.memory_space<vmem>>, vector<1x72x12xbf16>
    %2 = vector.shape_cast %1 : vector<1x72x12xbf16> to vector<72x12xbf16>
    %c0_2 = arith.constant 0 : index
    %c0_3 = arith.constant 0 : index
    %c0_4 = arith.constant 0 : index
    %3 = vector.load %arg2[%c0_2, %c0_3, %c0_4] : memref<4x12x32xbf16, #tpu.memory_space<vmem>>, vector<1x12x32xbf16>
    %4 = vector.shape_cast %3 : vector<1x12x32xbf16> to vector<12x32xbf16>
    %cst_5 = arith.constant dense<0.000000e+00> : vector<72x32xf32>
    %5 = tpu.matmul %2, %4, %cst_5 {dimension_numbers = #tpu.dot_dimension_numbers<[1], [0], [0], [1], [0, 0, 1, 1], [], []>} : vector<72x12xbf16>, vector<12x32xbf16>, vector<72x32xf32> -> vector<72x32xf32>
    %6 = arith.addf %0, %5 : vector<72x32xf32>
    %c0_6 = arith.constant 0 : index
    %c1 = arith.constant 1 : index
    %c0_7 = arith.constant 0 : index
    %7 = vector.load %arg1[%c0_6, %c1, %c0_7] : memref<1x88x12xbf16, #tpu.memory_space<vmem>>, vector<1x72x12xbf16>
    %8 = vector.shape_cast %7 : vector<1x72x12xbf16> to vector<72x12xbf16>
    %c1_8 = arith.constant 1 : index
    %c0_9 = arith.constant 0 : index
    %c0_10 = arith.constant 0 : index
    %9 = vector.load %arg2[%c1_8, %c0_9, %c0_10] : memref<4x12x32xbf16, #tpu.memory_space<vmem>>, vector<1x12x32xbf16>
    %10 = vector.shape_cast %9 : vector<1x12x32xbf16> to vector<12x32xbf16>
    %cst_11 = arith.constant dense<0.000000e+00> : vector<72x32xf32>
    %11 = tpu.matmul %8, %10, %cst_11 {dimension_numbers = #tpu.dot_dimension_numbers<[1], [0], [0], [1], [0, 0, 1, 1], [], []>} : vector<72x12xbf16>, vector<12x32xbf16>, vector<72x32xf32> -> vector<72x32xf32>
    %12 = arith.addf %6, %11 : vector<72x32xf32>
    %c0_12 = arith.constant 0 : index
    %c9 = arith.constant 9 : index
    %c0_13 = arith.constant 0 : index
    %13 = vector.load %arg1[%c0_12, %c9, %c0_13] : memref<1x88x12xbf16, #tpu.memory_space<vmem>>, vector<1x72x12xbf16>
    %14 = vector.shape_cast %13 : vector<1x72x12xbf16> to vector<72x12xbf16>
    %c2 = arith.constant 2 : index
    %c0_14 = arith.constant 0 : index
    %c0_15 = arith.constant 0 : index
    %15 = vector.load %arg2[%c2, %c0_14, %c0_15] : memref<4x12x32xbf16, #tpu.memory_space<vmem>>, vector<1x12x32xbf16>
    %16 = vector.shape_cast %15 : vector<1x12x32xbf16> to vector<12x32xbf16>
    %cst_16 = arith.constant dense<0.000000e+00> : vector<72x32xf32>
    %17 = tpu.matmul %14, %16, %cst_16 {dimension_numbers = #tpu.dot_dimension_numbers<[1], [0], [0], [1], [0, 0, 1, 1], [], []>} : vector<72x12xbf16>, vector<12x32xbf16>, vector<72x32xf32> -> vector<72x32xf32>
    %18 = arith.addf %12, %17 : vector<72x32xf32>
    %c0_17 = arith.constant 0 : index
    %c10 = arith.constant 10 : index
    %c0_18 = arith.constant 0 : index
    %19 = vector.load %arg1[%c0_17, %c10, %c0_18] : memref<1x88x12xbf16, #tpu.memory_space<vmem>>, vector<1x72x12xbf16>
    %20 = vector.shape_cast %19 : vector<1x72x12xbf16> to vector<72x12xbf16>
    %c3 = arith.constant 3 : index
    %c0_19 = arith.constant 0 : index
    %c0_20 = arith.constant 0 : index
    %21 = vector.load %arg2[%c3, %c0_19, %c0_20] : memref<4x12x32xbf16, #tpu.memory_space<vmem>>, vector<1x12x32xbf16>
    %22 = vector.shape_cast %21 : vector<1x12x32xbf16> to vector<12x32xbf16>
    %cst_21 = arith.constant dense<0.000000e+00> : vector<72x32xf32>
    %23 = tpu.matmul %20, %22, %cst_21 {dimension_numbers = #tpu.dot_dimension_numbers<[1], [0], [0], [1], [0, 0, 1, 1], [], []>} : vector<72x12xbf16>, vector<12x32xbf16>, vector<72x32xf32> -> vector<72x32xf32>
    %24 = arith.addf %18, %23 : vector<72x32xf32>
    %c0_22 = arith.constant 0 : index
    %c0_23 = arith.constant 0 : index
    %25 = vector.load %arg3[%c0_22, %c0_23] : memref<1x32xf32, #tpu.memory_space<vmem>>, vector<1x32xf32>
    %26 = vector.broadcast %25 : vector<1x32xf32> to vector<72x32xf32>
    %27 = arith.addf %24, %26 : vector<72x32xf32>
    %cst_24 = arith.constant 5.000000e-01 : f32
    %28 = vector.broadcast %cst_24 : f32 to vector<72x32xf32>
    %29 = arith.mulf %28, %27 : vector<72x32xf32>
    %cst_25 = arith.constant 4.471500e-02 : f32
    %30 = vector.broadcast %cst_25 : f32 to vector<72x32xf32>
    %31 = arith.mulf %30, %27 : vector<72x32xf32>
    %32 = arith.mulf %31, %27 : vector<72x32xf32>
    %33 = arith.mulf %32, %27 : vector<72x32xf32>
    %34 = arith.addf %27, %33 : vector<72x32xf32>
    %cst_26 = arith.constant 0.797884583 : f32
    %35 = vector.broadcast %cst_26 : f32 to vector<72x32xf32>
    %36 = arith.mulf %35, %34 : vector<72x32xf32>
    %37 = math.tanh %36 : vector<72x32xf32>
    %cst_27 = arith.constant 1.000000e+00 : f32
    %38 = vector.broadcast %cst_27 : f32 to vector<72x32xf32>
    %39 = arith.addf %38, %37 : vector<72x32xf32>
    %40 = arith.mulf %29, %39 : vector<72x32xf32>
    %41 = arith.truncf %40 : vector<72x32xf32> to vector<72x32xbf16>
    %c0_28 = arith.constant 0 : index
    %c0_29 = arith.constant 0 : index
    %c0_30 = arith.constant 0 : index
    %42 = vector.load %arg4[%c0_28, %c0_29, %c0_30] : memref<1x72x32xbf16, #tpu.memory_space<vmem>>, vector<1x72x32xbf16>
    %43 = vector.shape_cast %42 : vector<1x72x32xbf16> to vector<72x32xbf16>
    %44 = vector.shape_cast %41 : vector<72x32xbf16> to vector<1x72x32xbf16>
    tpu.vector_store %arg4[%c0_28, %c0_29, %c0_30], %44 {strides = array<i32>} : memref<1x72x32xbf16, #tpu.memory_space<vmem>>, vector<1x72x32xbf16>,
    return
  }
  func.func @transform_0(%arg0: i32) -> (i32, i32, i32) {
    %c0_i32 = arith.constant 0 : i32
    %c0_i32_0 = arith.constant 0 : i32
    %c0_i32_1 = arith.constant 0 : i32
    return %arg0, %c0_i32, %c0_i32_0 : i32, i32, i32
  }
  func.func @transform_1(%arg0: i32) -> (i32, i32, i32) {
    %c0_i32 = arith.constant 0 : i32
    %c0_i32_0 = arith.constant 0 : i32
    %c0_i32_1 = arith.constant 0 : i32
    %c0_i32_2 = arith.constant 0 : i32
    return %c0_i32, %c0_i32_0, %c0_i32_1 : i32, i32, i32
  }
  func.func @transform_2(%arg0: i32) -> (i32, i32) {
    %c0_i32 = arith.constant 0 : i32
    %c0_i32_0 = arith.constant 0 : i32
    %c0_i32_1 = arith.constant 0 : i32
    return %c0_i32, %c0_i32_0 : i32, i32
  }
  func.func @transform_3(%arg0: i32) -> (i32, i32, i32) {
    %c0_i32 = arith.constant 0 : i32
    %c0_i32_0 = arith.constant 0 : i32
    %c0_i32_1 = arith.constant 0 : i32
    return %arg0, %c0_i32, %c0_i32_0 : i32, i32, i32
  }
}

module attributes {stable_mosaic.version = 11 : i64} {
  func.func @_dsconv_kernel(%arg0: i32, %arg1: memref<1x32x128xbf16, #tpu.memory_space<vmem>>, %arg2: memref<4x128x64xbf16, #tpu.memory_space<vmem>>, %arg3: memref<1x64xf32, #tpu.memory_space<vmem>>, %arg4: memref<1x20x64xbf16, #tpu.memory_space<vmem>>) attributes {dimension_semantics = [#tpu.dimension_semantics<parallel>], iteration_bounds = array<i64: 2>, scalar_prefetch = 0 : i64, scratch_operands = 0 : i64, tpu.core_type = #tpu.core_type<tc>, window_params = [{transform_indices = @transform_0, window_bounds = array<i64: 1, 32, 128>}, {pipeline_mode = #tpu.pipeline_mode<synchronous>, transform_indices = @transform_1, window_bounds = array<i64: 4, 128, 64>}, {pipeline_mode = #tpu.pipeline_mode<synchronous>, transform_indices = @transform_2, window_bounds = array<i64: 1, 64>}, {transform_indices = @transform_3, window_bounds = array<i64: 1, 20, 64>}]} {
    %cst = arith.constant 0.000000e+00 : f32
    %0 = vector.broadcast %cst : f32 to vector<20x64xf32>
    %c0 = arith.constant 0 : index
    %c0_0 = arith.constant 0 : index
    %c0_1 = arith.constant 0 : index
    %1 = vector.load %arg1[%c0, %c0_0, %c0_1] : memref<1x32x128xbf16, #tpu.memory_space<vmem>>, vector<1x20x128xbf16>
    %2 = vector.shape_cast %1 : vector<1x20x128xbf16> to vector<20x128xbf16>
    %c0_2 = arith.constant 0 : index
    %c0_3 = arith.constant 0 : index
    %c0_4 = arith.constant 0 : index
    %3 = vector.load %arg2[%c0_2, %c0_3, %c0_4] : memref<4x128x64xbf16, #tpu.memory_space<vmem>>, vector<1x128x64xbf16>
    %4 = vector.shape_cast %3 : vector<1x128x64xbf16> to vector<128x64xbf16>
    %cst_5 = arith.constant dense<0.000000e+00> : vector<20x64xf32>
    %5 = tpu.matmul %2, %4, %cst_5 {dimension_numbers = #tpu.dot_dimension_numbers<[1], [0], [0], [1], [0, 0, 1, 1], [], []>} : vector<20x128xbf16>, vector<128x64xbf16>, vector<20x64xf32> -> vector<20x64xf32>
    %6 = arith.addf %0, %5 : vector<20x64xf32>
    %c0_6 = arith.constant 0 : index
    %c1 = arith.constant 1 : index
    %c0_7 = arith.constant 0 : index
    %7 = vector.load %arg1[%c0_6, %c1, %c0_7] : memref<1x32x128xbf16, #tpu.memory_space<vmem>>, vector<1x20x128xbf16>
    %8 = vector.shape_cast %7 : vector<1x20x128xbf16> to vector<20x128xbf16>
    %c1_8 = arith.constant 1 : index
    %c0_9 = arith.constant 0 : index
    %c0_10 = arith.constant 0 : index
    %9 = vector.load %arg2[%c1_8, %c0_9, %c0_10] : memref<4x128x64xbf16, #tpu.memory_space<vmem>>, vector<1x128x64xbf16>
    %10 = vector.shape_cast %9 : vector<1x128x64xbf16> to vector<128x64xbf16>
    %cst_11 = arith.constant dense<0.000000e+00> : vector<20x64xf32>
    %11 = tpu.matmul %8, %10, %cst_11 {dimension_numbers = #tpu.dot_dimension_numbers<[1], [0], [0], [1], [0, 0, 1, 1], [], []>} : vector<20x128xbf16>, vector<128x64xbf16>, vector<20x64xf32> -> vector<20x64xf32>
    %12 = arith.addf %6, %11 : vector<20x64xf32>
    %c0_12 = arith.constant 0 : index
    %c5 = arith.constant 5 : index
    %c0_13 = arith.constant 0 : index
    %13 = vector.load %arg1[%c0_12, %c5, %c0_13] : memref<1x32x128xbf16, #tpu.memory_space<vmem>>, vector<1x20x128xbf16>
    %14 = vector.shape_cast %13 : vector<1x20x128xbf16> to vector<20x128xbf16>
    %c2 = arith.constant 2 : index
    %c0_14 = arith.constant 0 : index
    %c0_15 = arith.constant 0 : index
    %15 = vector.load %arg2[%c2, %c0_14, %c0_15] : memref<4x128x64xbf16, #tpu.memory_space<vmem>>, vector<1x128x64xbf16>
    %16 = vector.shape_cast %15 : vector<1x128x64xbf16> to vector<128x64xbf16>
    %cst_16 = arith.constant dense<0.000000e+00> : vector<20x64xf32>
    %17 = tpu.matmul %14, %16, %cst_16 {dimension_numbers = #tpu.dot_dimension_numbers<[1], [0], [0], [1], [0, 0, 1, 1], [], []>} : vector<20x128xbf16>, vector<128x64xbf16>, vector<20x64xf32> -> vector<20x64xf32>
    %18 = arith.addf %12, %17 : vector<20x64xf32>
    %c0_17 = arith.constant 0 : index
    %c6 = arith.constant 6 : index
    %c0_18 = arith.constant 0 : index
    %19 = vector.load %arg1[%c0_17, %c6, %c0_18] : memref<1x32x128xbf16, #tpu.memory_space<vmem>>, vector<1x20x128xbf16>
    %20 = vector.shape_cast %19 : vector<1x20x128xbf16> to vector<20x128xbf16>
    %c3 = arith.constant 3 : index
    %c0_19 = arith.constant 0 : index
    %c0_20 = arith.constant 0 : index
    %21 = vector.load %arg2[%c3, %c0_19, %c0_20] : memref<4x128x64xbf16, #tpu.memory_space<vmem>>, vector<1x128x64xbf16>
    %22 = vector.shape_cast %21 : vector<1x128x64xbf16> to vector<128x64xbf16>
    %cst_21 = arith.constant dense<0.000000e+00> : vector<20x64xf32>
    %23 = tpu.matmul %20, %22, %cst_21 {dimension_numbers = #tpu.dot_dimension_numbers<[1], [0], [0], [1], [0, 0, 1, 1], [], []>} : vector<20x128xbf16>, vector<128x64xbf16>, vector<20x64xf32> -> vector<20x64xf32>
    %24 = arith.addf %18, %23 : vector<20x64xf32>
    %c0_22 = arith.constant 0 : index
    %c0_23 = arith.constant 0 : index
    %25 = vector.load %arg3[%c0_22, %c0_23] : memref<1x64xf32, #tpu.memory_space<vmem>>, vector<1x64xf32>
    %26 = vector.broadcast %25 : vector<1x64xf32> to vector<20x64xf32>
    %27 = arith.addf %24, %26 : vector<20x64xf32>
    %cst_24 = arith.constant 5.000000e-01 : f32
    %28 = vector.broadcast %cst_24 : f32 to vector<20x64xf32>
    %29 = arith.mulf %28, %27 : vector<20x64xf32>
    %cst_25 = arith.constant 4.471500e-02 : f32
    %30 = vector.broadcast %cst_25 : f32 to vector<20x64xf32>
    %31 = arith.mulf %30, %27 : vector<20x64xf32>
    %32 = arith.mulf %31, %27 : vector<20x64xf32>
    %33 = arith.mulf %32, %27 : vector<20x64xf32>
    %34 = arith.addf %27, %33 : vector<20x64xf32>
    %cst_26 = arith.constant 0.797884583 : f32
    %35 = vector.broadcast %cst_26 : f32 to vector<20x64xf32>
    %36 = arith.mulf %35, %34 : vector<20x64xf32>
    %37 = math.tanh %36 : vector<20x64xf32>
    %cst_27 = arith.constant 1.000000e+00 : f32
    %38 = vector.broadcast %cst_27 : f32 to vector<20x64xf32>
    %39 = arith.addf %38, %37 : vector<20x64xf32>
    %40 = arith.mulf %29, %39 : vector<20x64xf32>
    %41 = arith.truncf %40 : vector<20x64xf32> to vector<20x64xbf16>
    %c0_28 = arith.constant 0 : index
    %c0_29 = arith.constant 0 : index
    %c0_30 = arith.constant 0 : index
    %42 = vector.load %arg4[%c0_28, %c0_29, %c0_30] : memref<1x20x64xbf16, #tpu.memory_space<vmem>>, vector<1x20x64xbf16>
    %43 = vector.shape_cast %42 : vector<1x20x64xbf16> to vector<20x64xbf16>
    %44 = vector.shape_cast %41 : vector<20x64xbf16> to vector<1x20x64xbf16>
    tpu.vector_store %arg4[%c0_28, %c0_29, %c0_30], %44 {strides = array<i32>} : memref<1x20x64xbf16, #tpu.memory_space<vmem>>, vector<1x20x64xbf16>,
    return
  }
  func.func @transform_0(%arg0: i32) -> (i32, i32, i32) {
    %c0_i32 = arith.constant 0 : i32
    %c0_i32_0 = arith.constant 0 : i32
    %c0_i32_1 = arith.constant 0 : i32
    return %arg0, %c0_i32, %c0_i32_0 : i32, i32, i32
  }
  func.func @transform_1(%arg0: i32) -> (i32, i32, i32) {
    %c0_i32 = arith.constant 0 : i32
    %c0_i32_0 = arith.constant 0 : i32
    %c0_i32_1 = arith.constant 0 : i32
    %c0_i32_2 = arith.constant 0 : i32
    return %c0_i32, %c0_i32_0, %c0_i32_1 : i32, i32, i32
  }
  func.func @transform_2(%arg0: i32) -> (i32, i32) {
    %c0_i32 = arith.constant 0 : i32
    %c0_i32_0 = arith.constant 0 : i32
    %c0_i32_1 = arith.constant 0 : i32
    return %c0_i32, %c0_i32_0 : i32, i32
  }
  func.func @transform_3(%arg0: i32) -> (i32, i32, i32) {
    %c0_i32 = arith.constant 0 : i32
    %c0_i32_0 = arith.constant 0 : i32
    %c0_i32_1 = arith.constant 0 : i32
    return %arg0, %c0_i32, %c0_i32_0 : i32, i32, i32
  }
}

module attributes {stable_mosaic.version = 11 : i64} {
  func.func @_res_prequant_kernel(%arg0: i32, %arg1: memref<32x64xbf16, #tpu.memory_space<vmem>>, %arg2: memref<4x64x64xbf16, #tpu.memory_space<vmem>>, %arg3: memref<4x1x64xf32, #tpu.memory_space<vmem>>, %arg4: memref<64x128xbf16, #tpu.memory_space<vmem>>, %arg5: memref<1x128xf32, #tpu.memory_space<vmem>>, %arg6: memref<32x128xf32, #tpu.memory_space<vmem>>) attributes {dimension_semantics = [#tpu.dimension_semantics<parallel>], iteration_bounds = array<i64: 1>, scalar_prefetch = 0 : i64, scratch_operands = 0 : i64, tpu.core_type = #tpu.core_type<tc>, window_params = [{transform_indices = @transform_0, window_bounds = array<i64: 32, 64>}, {pipeline_mode = #tpu.pipeline_mode<synchronous>, transform_indices = @transform_1, window_bounds = array<i64: 4, 64, 64>}, {pipeline_mode = #tpu.pipeline_mode<synchronous>, transform_indices = @transform_2, window_bounds = array<i64: 4, 1, 64>}, {pipeline_mode = #tpu.pipeline_mode<synchronous>, transform_indices = @transform_3, window_bounds = array<i64: 64, 128>}, {pipeline_mode = #tpu.pipeline_mode<synchronous>, transform_indices = @transform_4, window_bounds = array<i64: 1, 128>}, {transform_indices = @transform_5, window_bounds = array<i64: 32, 128>}]} {
    %c0 = arith.constant 0 : index
    %c0_0 = arith.constant 0 : index
    %0 = vector.load %arg1[%c0, %c0_0] : memref<32x64xbf16, #tpu.memory_space<vmem>>, vector<32x64xbf16>
    %1 = arith.extf %0 : vector<32x64xbf16> to vector<32x64xf32>
    %cst = arith.constant 5.000000e-01 : f32
    %2 = vector.broadcast %cst : f32 to vector<32x64xf32>
    %3 = arith.mulf %2, %1 : vector<32x64xf32>
    %cst_1 = arith.constant 4.471500e-02 : f32
    %4 = vector.broadcast %cst_1 : f32 to vector<32x64xf32>
    %5 = arith.mulf %4, %1 : vector<32x64xf32>
    %6 = arith.mulf %5, %1 : vector<32x64xf32>
    %7 = arith.mulf %6, %1 : vector<32x64xf32>
    %8 = arith.addf %1, %7 : vector<32x64xf32>
    %cst_2 = arith.constant 0.797884583 : f32
    %9 = vector.broadcast %cst_2 : f32 to vector<32x64xf32>
    %10 = arith.mulf %9, %8 : vector<32x64xf32>
    %11 = math.tanh %10 : vector<32x64xf32>
    %cst_3 = arith.constant 1.000000e+00 : f32
    %12 = vector.broadcast %cst_3 : f32 to vector<32x64xf32>
    %13 = arith.addf %12, %11 : vector<32x64xf32>
    %14 = arith.mulf %3, %13 : vector<32x64xf32>
    %15 = arith.truncf %14 : vector<32x64xf32> to vector<32x64xbf16>
    %c0_4 = arith.constant 0 : index
    %c0_5 = arith.constant 0 : index
    %c0_6 = arith.constant 0 : index
    %16 = vector.load %arg2[%c0_4, %c0_5, %c0_6] : memref<4x64x64xbf16, #tpu.memory_space<vmem>>, vector<1x64x64xbf16>
    %17 = vector.shape_cast %16 : vector<1x64x64xbf16> to vector<64x64xbf16>
    %cst_7 = arith.constant dense<0.000000e+00> : vector<32x64xf32>
    %18 = tpu.matmul %15, %17, %cst_7 {dimension_numbers = #tpu.dot_dimension_numbers<[1], [0], [0], [1], [0, 0, 1, 1], [], []>} : vector<32x64xbf16>, vector<64x64xbf16>, vector<32x64xf32> -> vector<32x64xf32>
    %c0_8 = arith.constant 0 : index
    %c0_9 = arith.constant 0 : index
    %c0_10 = arith.constant 0 : index
    %19 = vector.load %arg3[%c0_8, %c0_9, %c0_10] : memref<4x1x64xf32, #tpu.memory_space<vmem>>, vector<1x1x64xf32>
    %20 = vector.shape_cast %19 : vector<1x1x64xf32> to vector<1x64xf32>
    %21 = vector.broadcast %20 : vector<1x64xf32> to vector<32x64xf32>
    %22 = arith.addf %18, %21 : vector<32x64xf32>
    %cst_11 = arith.constant 5.000000e-01 : f32
    %23 = vector.broadcast %cst_11 : f32 to vector<32x64xf32>
    %24 = arith.mulf %23, %22 : vector<32x64xf32>
    %cst_12 = arith.constant 4.471500e-02 : f32
    %25 = vector.broadcast %cst_12 : f32 to vector<32x64xf32>
    %26 = arith.mulf %25, %22 : vector<32x64xf32>
    %27 = arith.mulf %26, %22 : vector<32x64xf32>
    %28 = arith.mulf %27, %22 : vector<32x64xf32>
    %29 = arith.addf %22, %28 : vector<32x64xf32>
    %cst_13 = arith.constant 0.797884583 : f32
    %30 = vector.broadcast %cst_13 : f32 to vector<32x64xf32>
    %31 = arith.mulf %30, %29 : vector<32x64xf32>
    %32 = math.tanh %31 : vector<32x64xf32>
    %cst_14 = arith.constant 1.000000e+00 : f32
    %33 = vector.broadcast %cst_14 : f32 to vector<32x64xf32>
    %34 = arith.addf %33, %32 : vector<32x64xf32>
    %35 = arith.mulf %24, %34 : vector<32x64xf32>
    %36 = arith.truncf %35 : vector<32x64xf32> to vector<32x64xbf16>
    %c1 = arith.constant 1 : index
    %c0_15 = arith.constant 0 : index
    %c0_16 = arith.constant 0 : index
    %37 = vector.load %arg2[%c1, %c0_15, %c0_16] : memref<4x64x64xbf16, #tpu.memory_space<vmem>>, vector<1x64x64xbf16>
    %38 = vector.shape_cast %37 : vector<1x64x64xbf16> to vector<64x64xbf16>
    %cst_17 = arith.constant dense<0.000000e+00> : vector<32x64xf32>
    %39 = tpu.matmul %36, %38, %cst_17 {dimension_numbers = #tpu.dot_dimension_numbers<[1], [0], [0], [1], [0, 0, 1, 1], [], []>} : vector<32x64xbf16>, vector<64x64xbf16>, vector<32x64xf32> -> vector<32x64xf32>
    %c1_18 = arith.constant 1 : index
    %c0_19 = arith.constant 0 : index
    %c0_20 = arith.constant 0 : index
    %40 = vector.load %arg3[%c1_18, %c0_19, %c0_20] : memref<4x1x64xf32, #tpu.memory_space<vmem>>, vector<1x1x64xf32>
    %41 = vector.shape_cast %40 : vector<1x1x64xf32> to vector<1x64xf32>
    %42 = vector.broadcast %41 : vector<1x64xf32> to vector<32x64xf32>
    %43 = arith.addf %39, %42 : vector<32x64xf32>
    %44 = arith.addf %1, %43 : vector<32x64xf32>
    %cst_21 = arith.constant 5.000000e-01 : f32
    %45 = vector.broadcast %cst_21 : f32 to vector<32x64xf32>
    %46 = arith.mulf %45, %44 : vector<32x64xf32>
    %cst_22 = arith.constant 4.471500e-02 : f32
    %47 = vector.broadcast %cst_22 : f32 to vector<32x64xf32>
    %48 = arith.mulf %47, %44 : vector<32x64xf32>
    %49 = arith.mulf %48, %44 : vector<32x64xf32>
    %50 = arith.mulf %49, %44 : vector<32x64xf32>
    %51 = arith.addf %44, %50 : vector<32x64xf32>
    %cst_23 = arith.constant 0.797884583 : f32
    %52 = vector.broadcast %cst_23 : f32 to vector<32x64xf32>
    %53 = arith.mulf %52, %51 : vector<32x64xf32>
    %54 = math.tanh %53 : vector<32x64xf32>
    %cst_24 = arith.constant 1.000000e+00 : f32
    %55 = vector.broadcast %cst_24 : f32 to vector<32x64xf32>
    %56 = arith.addf %55, %54 : vector<32x64xf32>
    %57 = arith.mulf %46, %56 : vector<32x64xf32>
    %58 = arith.truncf %57 : vector<32x64xf32> to vector<32x64xbf16>
    %c2 = arith.constant 2 : index
    %c0_25 = arith.constant 0 : index
    %c0_26 = arith.constant 0 : index
    %59 = vector.load %arg2[%c2, %c0_25, %c0_26] : memref<4x64x64xbf16, #tpu.memory_space<vmem>>, vector<1x64x64xbf16>
    %60 = vector.shape_cast %59 : vector<1x64x64xbf16> to vector<64x64xbf16>
    %cst_27 = arith.constant dense<0.000000e+00> : vector<32x64xf32>
    %61 = tpu.matmul %58, %60, %cst_27 {dimension_numbers = #tpu.dot_dimension_numbers<[1], [0], [0], [1], [0, 0, 1, 1], [], []>} : vector<32x64xbf16>, vector<64x64xbf16>, vector<32x64xf32> -> vector<32x64xf32>
    %c2_28 = arith.constant 2 : index
    %c0_29 = arith.constant 0 : index
    %c0_30 = arith.constant 0 : index
    %62 = vector.load %arg3[%c2_28, %c0_29, %c0_30] : memref<4x1x64xf32, #tpu.memory_space<vmem>>, vector<1x1x64xf32>
    %63 = vector.shape_cast %62 : vector<1x1x64xf32> to vector<1x64xf32>
    %64 = vector.broadcast %63 : vector<1x64xf32> to vector<32x64xf32>
    %65 = arith.addf %61, %64 : vector<32x64xf32>
    %cst_31 = arith.constant 5.000000e-01 : f32
    %66 = vector.broadcast %cst_31 : f32 to vector<32x64xf32>
    %67 = arith.mulf %66, %65 : vector<32x64xf32>
    %cst_32 = arith.constant 4.471500e-02 : f32
    %68 = vector.broadcast %cst_32 : f32 to vector<32x64xf32>
    %69 = arith.mulf %68, %65 : vector<32x64xf32>
    %70 = arith.mulf %69, %65 : vector<32x64xf32>
    %71 = arith.mulf %70, %65 : vector<32x64xf32>
    %72 = arith.addf %65, %71 : vector<32x64xf32>
    %cst_33 = arith.constant 0.797884583 : f32
    %73 = vector.broadcast %cst_33 : f32 to vector<32x64xf32>
    %74 = arith.mulf %73, %72 : vector<32x64xf32>
    %75 = math.tanh %74 : vector<32x64xf32>
    %cst_34 = arith.constant 1.000000e+00 : f32
    %76 = vector.broadcast %cst_34 : f32 to vector<32x64xf32>
    %77 = arith.addf %76, %75 : vector<32x64xf32>
    %78 = arith.mulf %67, %77 : vector<32x64xf32>
    %79 = arith.truncf %78 : vector<32x64xf32> to vector<32x64xbf16>
    %c3 = arith.constant 3 : index
    %c0_35 = arith.constant 0 : index
    %c0_36 = arith.constant 0 : index
    %80 = vector.load %arg2[%c3, %c0_35, %c0_36] : memref<4x64x64xbf16, #tpu.memory_space<vmem>>, vector<1x64x64xbf16>
    %81 = vector.shape_cast %80 : vector<1x64x64xbf16> to vector<64x64xbf16>
    %cst_37 = arith.constant dense<0.000000e+00> : vector<32x64xf32>
    %82 = tpu.matmul %79, %81, %cst_37 {dimension_numbers = #tpu.dot_dimension_numbers<[1], [0], [0], [1], [0, 0, 1, 1], [], []>} : vector<32x64xbf16>, vector<64x64xbf16>, vector<32x64xf32> -> vector<32x64xf32>
    %c3_38 = arith.constant 3 : index
    %c0_39 = arith.constant 0 : index
    %c0_40 = arith.constant 0 : index
    %83 = vector.load %arg3[%c3_38, %c0_39, %c0_40] : memref<4x1x64xf32, #tpu.memory_space<vmem>>, vector<1x1x64xf32>
    %84 = vector.shape_cast %83 : vector<1x1x64xf32> to vector<1x64xf32>
    %85 = vector.broadcast %84 : vector<1x64xf32> to vector<32x64xf32>
    %86 = arith.addf %82, %85 : vector<32x64xf32>
    %87 = arith.addf %44, %86 : vector<32x64xf32>
    %cst_41 = arith.constant 5.000000e-01 : f32
    %88 = vector.broadcast %cst_41 : f32 to vector<32x64xf32>
    %89 = arith.mulf %88, %87 : vector<32x64xf32>
    %cst_42 = arith.constant 4.471500e-02 : f32
    %90 = vector.broadcast %cst_42 : f32 to vector<32x64xf32>
    %91 = arith.mulf %90, %87 : vector<32x64xf32>
    %92 = arith.mulf %91, %87 : vector<32x64xf32>
    %93 = arith.mulf %92, %87 : vector<32x64xf32>
    %94 = arith.addf %87, %93 : vector<32x64xf32>
    %cst_43 = arith.constant 0.797884583 : f32
    %95 = vector.broadcast %cst_43 : f32 to vector<32x64xf32>
    %96 = arith.mulf %95, %94 : vector<32x64xf32>
    %97 = math.tanh %96 : vector<32x64xf32>
    %cst_44 = arith.constant 1.000000e+00 : f32
    %98 = vector.broadcast %cst_44 : f32 to vector<32x64xf32>
    %99 = arith.addf %98, %97 : vector<32x64xf32>
    %100 = arith.mulf %89, %99 : vector<32x64xf32>
    %101 = arith.truncf %100 : vector<32x64xf32> to vector<32x64xbf16>
    %c0_45 = arith.constant 0 : index
    %c0_46 = arith.constant 0 : index
    %102 = vector.load %arg4[%c0_45, %c0_46] : memref<64x128xbf16, #tpu.memory_space<vmem>>, vector<64x128xbf16>
    %cst_47 = arith.constant dense<0.000000e+00> : vector<32x128xf32>
    %103 = tpu.matmul %101, %102, %cst_47 {dimension_numbers = #tpu.dot_dimension_numbers<[1], [0], [0], [1], [0, 0, 1, 1], [], []>} : vector<32x64xbf16>, vector<64x128xbf16>, vector<32x128xf32> -> vector<32x128xf32>
    %c0_48 = arith.constant 0 : index
    %c0_49 = arith.constant 0 : index
    %104 = vector.load %arg5[%c0_48, %c0_49] : memref<1x128xf32, #tpu.memory_space<vmem>>, vector<1x128xf32>
    %105 = vector.broadcast %104 : vector<1x128xf32> to vector<32x128xf32>
    %106 = arith.addf %103, %105 : vector<32x128xf32>
    %c0_50 = arith.constant 0 : index
    %c0_51 = arith.constant 0 : index
    %107 = vector.load %arg6[%c0_50, %c0_51] : memref<32x128xf32, #tpu.memory_space<vmem>>, vector<32x128xf32>
    tpu.vector_store %arg6[%c0_50, %c0_51], %106 {strides = array<i32>} : memref<32x128xf32, #tpu.memory_space<vmem>>, vector<32x128xf32>,
    return
  }
  func.func @transform_0(%arg0: i32) -> (i32, i32) {
    %c0_i32 = arith.constant 0 : i32
    %c0_i32_0 = arith.constant 0 : i32
    return %arg0, %c0_i32 : i32, i32
  }
  func.func @transform_1(%arg0: i32) -> (i32, i32, i32) {
    %c0_i32 = arith.constant 0 : i32
    %c0_i32_0 = arith.constant 0 : i32
    %c0_i32_1 = arith.constant 0 : i32
    %c0_i32_2 = arith.constant 0 : i32
    return %c0_i32, %c0_i32_0, %c0_i32_1 : i32, i32, i32
  }
  func.func @transform_2(%arg0: i32) -> (i32, i32, i32) {
    %c0_i32 = arith.constant 0 : i32
    %c0_i32_0 = arith.constant 0 : i32
    %c0_i32_1 = arith.constant 0 : i32
    %c0_i32_2 = arith.constant 0 : i32
    return %c0_i32, %c0_i32_0, %c0_i32_1 : i32, i32, i32
  }
  func.func @transform_3(%arg0: i32) -> (i32, i32) {
    %c0_i32 = arith.constant 0 : i32
    %c0_i32_0 = arith.constant 0 : i32
    %c0_i32_1 = arith.constant 0 : i32
    return %c0_i32, %c0_i32_0 : i32, i32
  }
  func.func @transform_4(%arg0: i32) -> (i32, i32) {
    %c0_i32 = arith.constant 0 : i32
    %c0_i32_0 = arith.constant 0 : i32
    %c0_i32_1 = arith.constant 0 : i32
    return %c0_i32, %c0_i32_0 : i32, i32
  }
  func.func @transform_5(%arg0: i32) -> (i32, i32) {
    %c0_i32 = arith.constant 0 : i32
    %c0_i32_0 = arith.constant 0 : i32
    return %arg0, %c0_i32 : i32, i32
  }
}

</mosaic_0001>

<bundles_post_ra>
// kernel: encoder_forward.3
= control target key start
LH: loop header
LB: loop body
LE: loop exit
PB: predicated region body
PF: predicated region fallthrough
CT: control target
= control target key end

     0   :  { %s1200_s12 = smov 0   ;;  %s1426_s0 = inlined_call_operand.vmem [shape: bf16[2,88,12], index: 0, kind: input, shape index: {}]   ;;  %s1427_s1 = inlined_call_operand.vmem [shape: bf16[4,12,32], index: 1, kind: input, shape index: {}]   ;;  %s1428_s2 = inlined_call_operand.vmem [shape: f32[1,32], index: 2, kind: input, shape index: {}]   ;;  %s1429_s3 = inlined_call_operand.vmem [shape: bf16[2,72,32], index: 3, kind: output, shape index: {}]  }
   0x1 LB: > { %s942_s13 = sadd.s32 4294967295, %s1176_s12   ;;  %p946_p0 = scmp.ge.s32.totalorder %s1176_s12, 1  ;;  %s1176_s12 = sphi %s1200_s12, %s13_s12  }
   0x2   : > { %p137_p1 = scmp.lt.s32.totalorder %s1176_s12, 3 }
   0x4   : > { %p138_p2 = pnand %p946_p0, %p137_p1 }
   0x5   : > { %vm273_vm0 = vcmask (!%p138_p2), 1045504   ;;  %v1178_v0 = vmov (!%p138_p2), 0.0   ;;  %v1136_v1 = vld [vmem:[%s1427_s1 + $0x8] sm:$0x3f] (!%p138_p2)   ;;  %v1137_v2 = vld [vmem:[%s1427_s1] sm:$0x3f] (!%p138_p2)  }
   0x6   : > { %141 = sbr.rel (%p138_p2) target bundleno = 344 (0x158), region = 32  ;;  %1036 = vmatprep.subr.bf16.mxu0 (!%p138_p2), %v1178_v0  ;;  %1058 = vmatprep.subr.bf16.mxu1 (!%p138_p2), %v1178_v0  ;;  %p161_p3 = scmp.lt.s32.totalorder (!%p138_p2), %s942_s13, 1  ;;  %v275_v3 = vsel (!%p138_p2), %vm273_vm0, %v1136_v1, 0  ;;  %vm1179_vm1 = vmmov (!%p138_p2), 0   ;;  %v367_v4 = vsel (!%p138_p2), %vm273_vm0, %v1137_v2, 0  ;;  %vm257_vm2 = vcmask (!%p138_p2), 97280  }
   0x7   : > { %1060 = vmatprep.mubr.msk.bf16.mxu1 (!%p138_p2), %vm1179_vm1, %v1178_v0  ;;  %1038 = vmatprep.mubr.msk.bf16.mxu0 (!%p138_p2), %vm1179_vm1, %v1178_v0  ;;  %v1141_v5 = vld [vmem:[%s1427_s1 + $0x18] sm:$0x3f] (!%p138_p2)   ;;  %v1140_v12 = vld [vmem:[%s1427_s1 + $0x10] sm:$0x3f] (!%p138_p2)   ;;  %vm212_vm3 = vsmask.f32 (!%p138_p2), 7424 }
   0x8   : > { %1037 = vmatpush3.bf16.msra.mxu0 (!%p138_p2), %v275_v3  ;;  %1059 = vmatpush3.bf16.msra.mxu1 (!%p138_p2), %v367_v4  ;;  %v660_v7 = vsel (!%p138_p2), %vm273_vm0, %v1141_v5, 0  ;;  %v539_v19 = vsel (!%p138_p2), %vm273_vm0, %v1140_v12, 0  ;;  %vm629_vm4 = vcmask (!%p138_p2), 1046528   ;;  %vm877_vm5 = vcmask (!%p138_p2), 257024  }
   0x9   : > { %1080 = vmatprep.subr.bf16.mxu0 (!%p138_p2), %v1178_v0  ;;  %1102 = vmatprep.subr.bf16.mxu1 (!%p138_p2), %v1178_v0 }
   0xd   : > { %s1431_s13 = smov (!%p161_p3, %s942_s13), 1 }
   0xe   : > { %s1124_s20 = smul.u32 44, %s1431_s13 }
   0xf   : > { %s1125_s28 = smul.u32 36, %s1431_s13 }
  0x10   : > { %s1233_s23 = scalar_lea.vmem %s1426_s0, %s1124_s20 }
  0x11   : > { %v1138_v6 = vld [vmem:[%s1233_s23] sm:$0xff]   ;;  %v1139_v8 = vld [vmem:[%s1233_s23 + $0x8] sm:$0xff]   ;;  %v1142_v13 = vld [vmem:[%s1233_s23 + $0x10] sm:$0xff]   ;;  %s1390_s4 = scalar_lea.vmem %s1429_s3, %s1125_s28 }
  0x12   : > { %1061 = vmatmul.mubr.msk.bf16.vlgmr.msra.gmra.mrb[0].mxu1 %vm257_vm2, %v1138_v6  ;;  %v214_v9 = vshrl.u32 %v1138_v6, 16  ;;  %v216_v10 = vshll.u32 %v1138_v6, 16  ;;  %v221_v11 = vshll.u32 %v1139_v8, 16  ;;  %v225_v17 = vshrl.u32 %v1139_v8, 16  ;;  %v1143_v23 = vld [vmem:[%s1233_s23 + $0x18] sm:$0xff]   ;;  %v1147_v43 = vld [vmem:[%s1233_s23 + $0xc] sm:$0xff]  }
  0x13   : > { %1103 = vmatpush3.bf16.msra.mxu1 %v660_v7  ;;  %1064 = vmatprep.mubr.msk.bf16.mxu1 %vm1179_vm1, %v1178_v0  ;;  %v229_v18 = vshll.u32 %v1142_v13, 16  ;;  %v233_v25 = vshrl.u32 %v1142_v13, 16  ;;  %v237_v26 = vshll.u32 %v1143_v23, 16  ;;  %v180_v27 = vld [vmem:[%s1233_s23 + $0x20] sm:$0xf]  ;;  %v241_v33 = vshrl.u32 %v1143_v23, 16 }
  0x14   : > { %v218_v14 = vrot.slane %v216_v10, 1  ;;  %v223_v15 = vrot.slane %v221_v11, 1  ;;  %v183_v28 = vld [vmem:[%s1233_s23 + $0x24] sm:$0x1]  ;;  %v442_v38 = vld [vmem:[%s1233_s23 + $0x8] sm:$0xf]  ;;  %v962_v42 = vcombine.low %v180_v27, %v180_v27 }
  0x15   : > { %v231_v22 = vrot.slane %v229_v18, 1  ;;  %v239_v30 = vrot.slane %v237_v26, 1  ;;  %v955_v31 = vcombine.low %v180_v27, %v183_v28  ;;  %v441_v37 = vld [vmem:[%s1233_s23 + $0x4] sm:$0xf]  ;;  %v631_v48 = vrot.slane %v1147_v43, 1  ;;  %v1149_v54 = vld [vmem:[%s1233_s23 + $0x14] sm:$0xff]  }
  0x16   : > { %v219_v16 = vor.u32 %v218_v14, %v214_v9  ;;  %v227_v21 = vor.u32 %v225_v17, %v223_v15  ;;  %v622_v39 = vld [vmem:[%s1233_s23 + $0x4] sm:$0xe]  ;;  %v971_v41 = vcombine.low %v441_v37, %v442_v38  ;;  %v487_v52 = vshll.u32 %v1147_v43, 16  ;;  %v1150_v62 = vld [vmem:[%s1233_s23 + $0x1c] sm:$0xff]  }
  0x17   : > { %v235_v29 = vor.u32 %v233_v25, %v231_v22  ;;  %v245_v34 = vshll.u32 %v955_v31, 16  ;;  %v243_v35 = vor.u32 %v241_v33, %v239_v30  ;;  %v984_v44 = vcombine.low %v622_v39, %v442_v38  ;;  %v1151_v7 = vld [vmem:[%s1233_s23 + $0x24] sm:$0x1f]  }
  0x18   : > { %v224_v20 = vsel %vm212_vm3, %v219_v16, %v223_v15  ;;  %v232_v24 = vsel %vm212_vm3, %v227_v21, %v231_v22  ;;  %v249_v45 = vshrl.u32 %v955_v31, 16  ;;  %v482_v46 = vshll.u32 %v971_v41, 16 }
  0x19   : > { %1039 = vmatmul.mubr.msk.bf16.vlgmr.msra.gmra.mrb[0].mxu0 %vm257_vm2, %v224_v20  ;;  %v240_v32 = vsel %vm212_vm3, %v235_v29, %v239_v30  ;;  %v247_v36 = vrot.slane %v245_v34, 1  ;;  %v630_v47 = vrot.slane %v984_v44, 1  ;;  %v480_v50 = vshrl.u32 %v971_v41, 16 }
  0x1a   : > { %1081 = vmatpush3.bf16.msra.mxu0 %v539_v19  ;;  %1042 = vmatprep.mubr.msk.bf16.mxu0 %vm1179_vm1, %v1178_v0  ;;  %v484_v51 = vrot.slane %v482_v46, 1  ;;  %v489_v56 = vrot.slane %v487_v52, 1  ;;  %v633_v57 = vrot.slane %v1149_v54, 1  ;;  %v491_v59 = vshrl.u32 %v1147_v43, 16 }
  0x1b   : > { %1065 = vmatmul.mubr.msk.bf16.gmra.mrb[4].mxu1 %vm257_vm2, %v1139_v8  ;;  %v248_v40 = vsel %vm212_vm3, %v243_v35, %v247_v36  ;;  %v251_v49 = vor.u32 %v249_v45, %v247_v36  ;;  %v632_v53 = vsel %vm629_vm4, %v630_v47, %v631_v48  ;;  %v495_v60 = vshll.u32 %v1149_v54, 16 }
  0x1c   : > { %1068 = vmatprep.mubr.msk.bf16.mxu1 %vm1179_vm1, %v1178_v0  ;;  %v485_v55 = vor.u32 %v484_v51, %v480_v50  ;;  %v634_v61 = vsel %vm629_vm4, %v631_v48, %v633_v57  ;;  %v493_v63 = vor.u32 %v491_v59, %v489_v56  ;;  %v635_v2 = vrot.slane %v1150_v62, 1 }
  0x1d   : > { %v497_v1 = vrot.slane %v495_v60, 1  ;;  %v499_v4 = vshrl.u32 %v1149_v54, 16  ;;  %v503_v5 = vshll.u32 %v1150_v62, 16  ;;  %v637_v10 = vrot.slane %v1151_v7, 1 }
  0x1e   : > { %v490_v58 = vsel %vm212_vm3, %v485_v55, %v489_v56  ;;  %v636_v6 = vsel %vm629_vm4, %v633_v57, %v635_v2  ;;  %v507_v12 = vshrl.u32 %v1150_v62, 16  ;;  %v515_v18 = vshrl.u32 %v1151_v7, 16 }
  0x1f   : > { %v498_v3 = vsel %vm212_vm3, %v493_v63, %v497_v1  ;;  %v501_v8 = vor.u32 %v499_v4, %v497_v1  ;;  %v505_v9 = vrot.slane %v503_v5, 1  ;;  %v638_v14 = vsel %vm629_vm4, %v635_v2, %v637_v10 }
  0x21   : > { %1043 = vmatmul.mubr.msk.bf16.gmra.mrb[4].mxu0 %vm257_vm2, %v232_v24  ;;  %v506_v11 = vsel %vm212_vm3, %v501_v8, %v505_v9  ;;  %v509_v15 = vor.u32 %v507_v12, %v505_v9  ;;  %v1334_v12 = vld [vmem:[%s1428_s2] ss:$0 sm:$0xff] }
  0x22   : > { %1046 = vmatprep.mubr.msk.bf16.mxu0 %vm1179_vm1, %v1178_v0 }
  0x23   : > { %1069 = vmatmul.mubr.msk.bf16.gmra.mrb[8].mxu1 %vm257_vm2, %v1142_v13  ;;  %v511_v13 = vshll.u32 %v1151_v7, 16 }
  0x24   : > { %1072 = vmatprep.mubr.msk.bf16.mxu1 %vm1179_vm1, %v1178_v0 }
  0x25   : > { %v513_v16 = vrot.slane %v511_v13, 1 }
  0x27   : > { %v514_v17 = vsel %vm212_vm3, %v509_v15, %v513_v16  ;;  %v517_v19 = vor.u32 %v515_v18, %v513_v16 }
  0x29   : > { %1047 = vmatmul.mubr.msk.bf16.gmra.mrb[8].mxu0 %vm257_vm2, %v240_v32 }
  0x2a   : > { %1050 = vmatprep.mubr.msk.bf16.mxu0 %vm1179_vm1, %v1178_v0 }
  0x2b   : > { %1073 = vmatmul.mubr.msk.bf16.gmra.mrb[12].mxu1 %vm257_vm2, %v1143_v23 }
  0x2c   : > { %1076 = vmatprep.mubr.msk.bf16.mxu1 %vm1179_vm1, %v1178_v0 }
  0x31   : > { %1051 = vmatmul.mubr.msk.bf16.gmra.mrb[12].mxu0 %vm257_vm2, %v248_v40 }
  0x32   : > { %1054 = vmatprep.mubr.msk.bf16.mxu0 %vm1179_vm1, %v1178_v0 }
  0x33   : > { %1077 = vmatmul.mubr.msk.bf16.gmra.mrb[16].mxu1 %vm257_vm2, %v962_v42 }
  0x34   : > { %1104 = vmatprep.mubr.msk.bf16.mxu1 %vm1179_vm1, %v1178_v0 }
  0x39   : > { %1055 = vmatmul.mubr.msk.bf16.gmra.mrb[16].mxu0 %vm257_vm2, %v251_v49 }
  0x3a   : > { %1082 = vmatprep.mubr.msk.bf16.mxu0 %vm1179_vm1, %v1178_v0 }
  0x3b   : > { %1105 = vmatmul.mubr.msk.bf16.vlgmr.msra.gmra.mrb[20].mxu1 %vm257_vm2, %v632_v53 }
  0x3c   : > { %1108 = vmatprep.mubr.msk.bf16.mxu1 %vm1179_vm1, %v1178_v0 }
  0x41   : > { %1083 = vmatmul.mubr.msk.bf16.vlgmr.msra.gmra.mrb[20].mxu0 %vm257_vm2, %v490_v58 }
  0x42   : > { %1086 = vmatprep.mubr.msk.bf16.mxu0 %vm1179_vm1, %v1178_v0 }
  0x43   : > { %1109 = vmatmul.mubr.msk.bf16.gmra.mrb[24].mxu1 %vm257_vm2, %v634_v61 }
  0x44   : > { %1112 = vmatprep.mubr.msk.bf16.mxu1 %vm1179_vm1, %v1178_v0 }
  0x49   : > { %1087 = vmatmul.mubr.msk.bf16.gmra.mrb[24].mxu0 %vm257_vm2, %v498_v3 }
  0x4a   : > { %1090 = vmatprep.mubr.msk.bf16.mxu0 %vm1179_vm1, %v1178_v0 }
  0x4b   : > { %1113 = vmatmul.mubr.msk.bf16.gmra.mrb[28].mxu1 %vm257_vm2, %v636_v6 }
  0x4c   : > { %1116 = vmatprep.mubr.msk.bf16.mxu1 %vm1179_vm1, %v1178_v0 }
  0x51   : > { %1091 = vmatmul.mubr.msk.bf16.gmra.mrb[28].mxu0 %vm257_vm2, %v506_v11 }
  0x52   : > { %1094 = vmatprep.mubr.msk.bf16.mxu0 %vm1179_vm1, %v1178_v0 }
  0x53   : > { %1117 = vmatmul.mubr.msk.bf16.gmra.mrb[32].mxu1 %vm257_vm2, %v638_v14 }
  0x54   : > { %1120 = vmatprep.mubr.msk.bf16.mxu1 %vm1179_vm1, %v1178_v0 }
  0x59   : > { %1095 = vmatmul.mubr.msk.bf16.gmra.mrb[32].mxu0 %vm257_vm2, %v514_v17 }
  0x5a   : > { %1098 = vmatprep.mubr.msk.bf16.mxu0 %vm1179_vm1, %v1178_v0 }
  0x5b   : > { %1121 = vmatmul.mubr.msk.bf16.gmra.mrb[36].mxu1 %vm257_vm2, %v637_v10 }
  0x61   : > { %1099 = vmatmul.mubr.msk.bf16.gmra.mrb[36].mxu0 %vm257_vm2, %v517_v19 }
  0xe5   : > { %v403_v20 = vpop.f32.mrb[0].mxu1 }
  0xe6   : > { %v1062_v21 = vpop.f32.mrb[1].mxu1 }
  0xe7   : > { %v406_v22 = vpop.f32.mrb[2].mxu1 }
  0xe8   : > { %v1063_v23 = vpop.f32.mrb[3].mxu1 }
  0xec   : > { %v311_v24 = vpop.f32.mrb[0].mxu0 }
  0xed   : > { %v404_v25 = vadd.f32 %v403_v20, %v311_v24  ;;  %v1040_v26 = vpop.f32.mrb[1].mxu0 }
  0xee   : > { %v314_v27 = vpop.f32.mrb[2].mxu0  ;;  %v411_v28 = vpop.f32.mrb[4].mxu1 }
  0xef   : > { %v407_v29 = vadd.f32 %v406_v22, %v314_v27  ;;  %v1041_v30 = vpop.f32.mrb[3].mxu0  ;;  %v1066_v31 = vpop.f32.mrb[5].mxu1 }
  0xf0   : > { %v414_v32 = vpop.f32.mrb[6].mxu1 }
  0xf1   : > { %v1067_v33 = vpop.f32.mrb[7].mxu1 }
  0xf4   : > { %v319_v0 = vpop.f32.mrb[4].mxu0 }
  0xf5   : > { %v412_v34 = vadd.f32 %v411_v28, %v319_v0  ;;  %v1044_v35 = vpop.f32.mrb[5].mxu0 }
  0xf6   : > { %v322_v36 = vpop.f32.mrb[6].mxu0  ;;  %v419_v37 = vpop.f32.mrb[8].mxu1 }
  0xf7   : > { %v415_v38 = vadd.f32 %v414_v32, %v322_v36  ;;  %v1045_v39 = vpop.f32.mrb[7].mxu0  ;;  %v1070_v40 = vpop.f32.mrb[9].mxu1 }
  0xf8   : > { %v422_v41 = vpop.f32.mrb[10].mxu1 }
  0xf9   : > { %v1071_v42 = vpop.f32.mrb[11].mxu1 }
  0xfc   : > { %v327_v43 = vpop.f32.mrb[8].mxu0 }
  0xfd   : > { %v1321_v44 = vadd.f32 %v419_v37, %v327_v43  ;;  %v1048_v45 = vpop.f32.mrb[9].mxu0 }
  0xfe   : > { %v330_v46 = vpop.f32.mrb[10].mxu0  ;;  %v427_v47 = vpop.f32.mrb[12].mxu1 }
  0xff   : > { %v1323_v48 = vadd.f32 %v422_v41, %v330_v46  ;;  %v1049_v49 = vpop.f32.mrb[11].mxu0  ;;  %v1074_v50 = vpop.f32.mrb[13].mxu1 }
 0x100   : > { %v430_v51 = vpop.f32.mrb[14].mxu1 }
 0x101   : > { %v1075_v52 = vpop.f32.mrb[15].mxu1 }
 0x104   : > { %v335_v53 = vpop.f32.mrb[12].mxu0 }
 0x105   : > { %v1325_v54 = vadd.f32 %v427_v47, %v335_v53  ;;  %v1052_v55 = vpop.f32.mrb[13].mxu0 }
 0x106   : > { %v338_v56 = vpop.f32.mrb[14].mxu0  ;;  %v435_v57 = vpop.f32.mrb[16].mxu1 }
 0x107   : > { %v1327_v58 = vadd.f32 %v430_v51, %v338_v56  ;;  %v1053_v59 = vpop.f32.mrb[15].mxu0  ;;  %v1078_v60 = vpop.f32.mrb[17].mxu1 }
 0x108   : > { %v438_v61 = vpop.f32.mrb[18].mxu1 }
 0x109   : > { %v1079_v62 = vpop.f32.mrb[19].mxu1 }
 0x10c   : > { %v343_v63 = vpop.f32.mrb[16].mxu0 }
 0x10d   : > { %v1329_v1 = vadd.f32 %v435_v57, %v343_v63  ;;  %v1056_v2 = vpop.f32.mrb[17].mxu0 }
 0x10e   : > { %v346_v3 = vpop.f32.mrb[18].mxu0  ;;  %v696_v4 = vpop.f32.mrb[20].mxu1 }
 0x10f   : > { %v1057_v5 = vpop.f32.mrb[19].mxu0  ;;  %v1106_v6 = vpop.f32.mrb[21].mxu1 }
 0x110   : > { %v699_v7 = vpop.f32.mrb[22].mxu1 }
 0x111   : > { %v1107_v8 = vpop.f32.mrb[23].mxu1 }
 0x114   : > { %v575_v9 = vpop.f32.mrb[20].mxu0 }
 0x115   : > { %v613_v10 = vadd.f32 %v575_v9, %v404_v25  ;;  %v1084_v11 = vpop.f32.mrb[21].mxu0 }
 0x116   : > { %v578_v13 = vpop.f32.mrb[22].mxu0  ;;  %v704_v14 = vpop.f32.mrb[24].mxu1 }
 0x117   : > { %v734_v15 = vadd.f32 %v696_v4, %v613_v10  ;;  %v614_v16 = vadd.f32 %v578_v13, %v407_v29  ;;  %v1085_v17 = vpop.f32.mrb[23].mxu0  ;;  %v1110_v18 = vpop.f32.mrb[25].mxu1 }
 0x118   : > { %v707_v19 = vpop.f32.mrb[26].mxu1 }
 0x119   : > { %v1337_v20 = vadd.f32 %v1334_v12, %v734_v15  ;;  %v735_v21 = vadd.f32 %v699_v7, %v614_v16  ;;  %v1111_v22 = vpop.f32.mrb[27].mxu1 }
 0x11b   : > { %v768_v23 = vmul.f32 0.044715, %v1337_v20  ;;  %v1341_v24 = vadd.f32 %v1334_v12, %v735_v21 }
 0x11c   : > { %v583_v25 = vpop.f32.mrb[24].mxu0 }
 0x11d   : > { %v777_v26 = vmul.f32 %v768_v23, %v1337_v20  ;;  %v769_v27 = vmul.f32 0.044715, %v1341_v24  ;;  %v615_v28 = vadd.f32 %v583_v25, %v412_v34  ;;  %v1088_v29 = vpop.f32.mrb[25].mxu0 }
 0x11e   : > { %v586_v30 = vpop.f32.mrb[26].mxu0  ;;  %v712_v31 = vpop.f32.mrb[28].mxu1 }
 0x11f   : > { %v786_v32 = vmul.f32 %v777_v26, %v1337_v20  ;;  %v778_v33 = vmul.f32 %v769_v27, %v1341_v24  ;;  %v736_v0 = vadd.f32 %v704_v14, %v615_v28  ;;  %v616_v35 = vadd.f32 %v586_v30, %v415_v38  ;;  %v1089_v36 = vpop.f32.mrb[27].mxu0  ;;  %v1114_v37 = vpop.f32.mrb[29].mxu1 }
 0x120   : > { %v715_v39 = vpop.f32.mrb[30].mxu1  ;;  %v759_v28 = vmul.f32 0.5, %v1337_v20  ;;  %v760_v37 = vmul.f32 0.5, %v1341_v24 }
 0x121   : > { %v795_v40 = vadd.f32 %v786_v32, %v1337_v20  ;;  %v787_v41 = vmul.f32 %v778_v33, %v1341_v24  ;;  %v1350_v42 = vadd.f32 %v1334_v12, %v736_v0  ;;  %v737_v34 = vadd.f32 %v707_v19, %v616_v35  ;;  %v1115_v43 = vpop.f32.mrb[31].mxu1 }
 0x123   : > { %v804_v45 = vmul.f32 0.7978846, %v795_v40  ;;  %v796_v46 = vadd.f32 %v787_v41, %v1341_v24  ;;  %v770_v47 = vmul.f32 0.044715, %v1350_v42  ;;  %v1355_v49 = vadd.f32 %v1334_v12, %v737_v34 }
 0x124   : > { %v591_v38 = vpop.f32.mrb[28].mxu0 }
 0x125   : > { %1152 = vtanh.f32 %v804_v45  ;;  %v805_v50 = vmul.f32 0.7978846, %v796_v46  ;;  %v779_v51 = vmul.f32 %v770_v47, %v1350_v42  ;;  %v617_v52 = vadd.f32 %v591_v38, %v1321_v44  ;;  %v1092_v53 = vpop.f32.mrb[29].mxu0 }
 0x126   : > { %v771_v55 = vmul.f32 0.044715, %v1355_v49  ;;  %v594_v56 = vpop.f32.mrb[30].mxu0  ;;  %v720_v57 = vpop.f32.mrb[32].mxu1 }
 0x127   : > { %1154 = vtanh.f32 %v805_v50  ;;  %v788_v59 = vmul.f32 %v779_v51, %v1350_v42  ;;  %v738_v60 = vadd.f32 %v712_v31, %v617_v52  ;;  %v618_v61 = vadd.f32 %v594_v56, %v1323_v48  ;;  %v1093_v62 = vpop.f32.mrb[31].mxu0  ;;  %v1118_v63 = vpop.f32.mrb[33].mxu1 }
 0x128   : > { %v780_v2 = vmul.f32 %v771_v55, %v1355_v49  ;;  %v723_v3 = vpop.f32.mrb[34].mxu1 }
 0x129   : > { %v797_v4 = vadd.f32 %v788_v59, %v1350_v42  ;;  %v1365_v44 = vadd.f32 %v1334_v12, %v738_v60  ;;  %v739_v5 = vadd.f32 %v715_v39, %v618_v61  ;;  %v1119_v6 = vpop.f32.mrb[35].mxu1  ;;  %v761_v59 = vmul.f32 0.5, %v1350_v42 }
 0x12a   : > { %v789_v7 = vmul.f32 %v780_v2, %v1355_v49 }
 0x12b   : > { %v806_v8 = vmul.f32 0.7978846, %v797_v4  ;;  %v772_v9 = vmul.f32 0.044715, %v1365_v44  ;;  %v1370_v48 = vadd.f32 %v1334_v12, %v739_v5  ;;  %v762_v5 = vmul.f32 0.5, %v1355_v49 }
 0x12c   : > { %v798_v10 = vadd.f32 %v789_v7, %v1355_v49  ;;  %v599_v11 = vpop.f32.mrb[32].mxu0 }
 0x12d   : > { %1156 = vtanh.f32 %v806_v8  ;;  %v781_v13 = vmul.f32 %v772_v9, %v1365_v44  ;;  %v773_v14 = vmul.f32 0.044715, %v1370_v48  ;;  %v1096_v15 = vpop.f32.mrb[33].mxu0  ;;  %v619_v17 = vadd.f32 %v599_v11, %v1325_v54 }
 0x12e   : > { %v807_v16 = vmul.f32 0.7978846, %v798_v10  ;;  %v602_v18 = vpop.f32.mrb[34].mxu0  ;;  %v728_v19 = vpop.f32.mrb[36].mxu1 }
 0x12f   : > { %v1153_v21 = vpop.eup %1152  ;;  %v790_v22 = vmul.f32 %v781_v13, %v1365_v44  ;;  %v782_v23 = vmul.f32 %v773_v14, %v1370_v48  ;;  %v620_v25 = vadd.f32 %v602_v18, %v1327_v58  ;;  %v1097_v26 = vpop.f32.mrb[35].mxu0  ;;  %v740_v30 = vadd.f32 %v720_v57, %v619_v17 }
 0x130   : > { %v1122_v27 = vpop.f32.mrb[37].mxu1  ;;  %v822_v29 = vadd.f32 1.0, %v1153_v21  ;;  %1158 = vtanh.f32 %v807_v16 }
 0x131   : > { %v731_v31 = vpop.f32.mrb[38].mxu1  ;;  %v1155_v32 = vpop.eup %1154  ;;  %v799_v54 = vadd.f32 %v790_v22, %v1365_v44  ;;  %v791_v33 = vmul.f32 %v782_v23, %v1370_v48  ;;  %v741_v0 = vadd.f32 %v723_v3, %v620_v25  ;;  %v1385_v58 = vadd.f32 %v1334_v12, %v740_v30 }
 0x132   : > { %v1123_v35 = vpop.f32.mrb[39].mxu1  ;;  %v831_v36 = vmul.f32 %v822_v29, %v759_v28  ;;  %v823_v39 = vadd.f32 1.0, %v1155_v32 }
 0x133   : > { %v808_v20 = vmul.f32 0.7978846, %v799_v54  ;;  %v800_v40 = vadd.f32 %v791_v33, %v1370_v48  ;;  %v757_v41 = vadd.f32 %v1334_v12, %v741_v0  ;;  %v774_v24 = vmul.f32 0.044715, %v1385_v58 }
 0x134   : > { %v1003_v34 = vpack.c.bf16 %v831_v36, %v831_v36  ;;  %v832_v43 = vmul.f32 %v823_v39, %v760_v37  ;;  %v607_v45 = vpop.f32.mrb[36].mxu0  ;;  %v765_v29 = vmul.f32 0.5, %v1385_v58 }
 0x135   : > { %1160 = vtanh.f32 %v808_v20  ;;  %v809_v46 = vmul.f32 0.7978846, %v800_v40  ;;  %v775_v47 = vmul.f32 0.044715, %v757_v41  ;;  %v1100_v38 = vpop.f32.mrb[37].mxu0  ;;  %v783_v51 = vmul.f32 %v774_v24, %v1385_v58 }
 0x136   : > { %878 = vst.msk [vmem:[%s1390_s4] sm:$0xf] %vm877_vm5, %v1003_v34  ;;  %v1004_v50 = vpack.c.bf16 %v832_v43, %v832_v43  ;;  %v621_v52 = vadd.f32 %v607_v45, %v1329_v1  ;;  %v610_v53 = vpop.f32.mrb[38].mxu0 }
 0x137   : > { %v1157_v55 = vpop.eup %1156  ;;  %1162 = vtanh.f32 %v809_v46  ;;  %v784_v56 = vmul.f32 %v775_v47, %v757_v41  ;;  %v1101_v57 = vpop.f32.mrb[39].mxu0  ;;  %v792_v61 = vmul.f32 %v783_v51, %v1385_v58 }
 0x138   : > { %879 = vst.msk [vmem:[%s1390_s4 + $0x4] sm:$0xf] %vm877_vm5, %v1004_v50  ;;  %v824_v60 = vadd.f32 1.0, %v1157_v55  ;;  %v742_v62 = vadd.f32 %v728_v19, %v621_v52  ;;  %v764_v19 = vmul.f32 0.5, %v1370_v48  ;;  %v766_v48 = vmul.f32 0.5, %v757_v41 }
 0x139   : > { %v793_v63 = vmul.f32 %v784_v56, %v757_v41  ;;  %v801_v4 = vadd.f32 %v792_v61, %v1385_v58 }
 0x13a   : > { %v1159_v2 = vpop.eup %1158  ;;  %v833_v3 = vmul.f32 %v824_v60, %v761_v59  ;;  %v758_v1 = vadd.f32 %v1334_v12, %v742_v62  ;;  %v763_v12 = vmul.f32 0.5, %v1365_v44 }
 0x13b   : > { %v825_v6 = vadd.f32 1.0, %v1159_v2  ;;  %v802_v7 = vadd.f32 %v793_v63, %v757_v41  ;;  %v810_v9 = vmul.f32 0.7978846, %v801_v4 }
 0x13c   : > { %v1005_v8 = vpack.c.bf16 %v833_v3, %v833_v3  ;;  %v776_v42 = vmul.f32 0.044715, %v758_v1  ;;  %v767_v36 = vmul.f32 0.5, %v758_v1 }
 0x13d   : > { %v834_v10 = vmul.f32 %v825_v6, %v762_v5  ;;  %v811_v11 = vmul.f32 0.7978846, %v802_v7  ;;  %1164 = vtanh.f32 %v810_v9 }
 0x13e   : > { %880 = vst.msk [vmem:[%s1390_s4 + $0x8] sm:$0xf] %vm877_vm5, %v1005_v8  ;;  %v785_v13 = vmul.f32 %v776_v42, %v758_v1 }
 0x13f   : > { %v1161_v14 = vpop.eup %1160  ;;  %v1006_v15 = vpack.c.bf16 %v834_v10, %v834_v10  ;;  %1166 = vtanh.f32 %v811_v11 }
 0x140   : > { %v826_v49 = vadd.f32 1.0, %v1161_v14  ;;  %v794_v16 = vmul.f32 %v785_v13, %v758_v1 }
 0x141   : > { %v1163_v17 = vpop.eup %1162  ;;  %881 = vst.msk [vmem:[%s1390_s4 + $0xc] sm:$0xf] %vm877_vm5, %v1006_v15 }
 0x142   : > { %v835_v18 = vmul.f32 %v826_v49, %v763_v12  ;;  %v827_v21 = vadd.f32 1.0, %v1163_v17  ;;  %v803_v22 = vadd.f32 %v794_v16, %v758_v1 }
 0x144   : > { %v1007_v23 = vpack.c.bf16 %v835_v18, %v835_v18  ;;  %v836_v25 = vmul.f32 %v827_v21, %v764_v19  ;;  %v812_v26 = vmul.f32 0.7978846, %v803_v22 }
 0x146   : > { %882 = vst.msk [vmem:[%s1390_s4 + $0x10] sm:$0xf] %vm877_vm5, %v1007_v23  ;;  %v1008_v27 = vpack.c.bf16 %v836_v25, %v836_v25  ;;  %1168 = vtanh.f32 %v812_v26 }
 0x147   : > { %v1165_v44 = vpop.eup %1164 }
 0x148   : > { %883 = vst.msk [vmem:[%s1390_s4 + $0x14] sm:$0xf] %vm877_vm5, %v1008_v27  ;;  %v828_v30 = vadd.f32 1.0, %v1165_v44 }
 0x149   : > { %v1167_v28 = vpop.eup %1166 }
 0x14a   : > { %v829_v31 = vadd.f32 1.0, %v1167_v28  ;;  %v837_v32 = vmul.f32 %v828_v30, %v765_v29 }
 0x14c   : > { %v838_v54 = vmul.f32 %v829_v31, %v766_v48  ;;  %v1009_v33 = vpack.c.bf16 %v837_v32, %v837_v32 }
 0x14e   : > { %v1010_v0 = vpack.c.bf16 %v838_v54, %v838_v54  ;;  %884 = vst.msk [vmem:[%s1390_s4 + $0x18] sm:$0xf] %vm877_vm5, %v1009_v33 }
 0x150   : > { %v1169_v35 = vpop.eup %1168  ;;  %885 = vst.msk [vmem:[%s1390_s4 + $0x1c] sm:$0xf] %vm877_vm5, %v1010_v0 }
 0x151   : > { %v830_v37 = vadd.f32 1.0, %v1169_v35 }
 0x153   : > { %v839_v39 = vmul.f32 %v830_v37, %v767_v36 }
 0x155   : > { %v1011_v20 = vpack.c.bf16 %v839_v39, %v839_v39 }
 0x157   : > { %886 = vst.msk [vmem:[%s1390_s4 + $0x20] sm:$0xf] %vm877_vm5, %v1011_v20 }
 0x158 PF: > { %s13_s12 = sadd.s32 1, %s1176_s12  }
 0x159   : > { %p10_p4 = scmp.ge.s32.totalorder %s13_s12, 4  }
 0x15b   :  { %12 = sbr.rel (!%p10_p4) target bundleno = 1 (0x1), region = 65 }

// kernel: encoder_forward.4
= control target key start
LH: loop header
LB: loop body
LE: loop exit
PB: predicated region body
PF: predicated region fallthrough
CT: control target
= control target key end

     0   :  { %s1123_s12 = smov 0   ;;  %s1253_s0 = inlined_call_operand.vmem [shape: bf16[2,32,128], index: 0, kind: input, shape index: {}]   ;;  %s1254_s1 = inlined_call_operand.vmem [shape: bf16[4,128,64], index: 1, kind: input, shape index: {}]   ;;  %s1255_s2 = inlined_call_operand.vmem [shape: f32[1,64], index: 2, kind: input, shape index: {}]   ;;  %s1256_s3 = inlined_call_operand.vmem [shape: bf16[2,20,64], index: 3, kind: output, shape index: {}]  }
   0x1 LB: > { %s818_s13 = sadd.s32 4294967295, %s1101_s12   ;;  %p822_p0 = scmp.ge.s32.totalorder %s1101_s12, 1  ;;  %s1101_s12 = sphi %s1123_s12, %s13_s12  }
   0x2   : > { %p137_p1 = scmp.lt.s32.totalorder %s1101_s12, 3 }
   0x4   : > { %p138_p2 = pnand %p822_p0, %p137_p1 }
   0x5   : > { %v1051_v0 = vld [vmem:[%s1254_s1 + $0x40] sm:$0xff] (!%p138_p2)   ;;  %v1053_v2 = vld [vmem:[%s1254_s1 + $0x48] sm:$0xff] (!%p138_p2)   ;;  %p161_p3 = scmp.lt.s32.totalorder (!%p138_p2), %s818_s13, 1  ;;  %v1055_v4 = vld [vmem:[%s1254_s1 + $0x50] sm:$0xff] (!%p138_p2)   ;;  %vm217_vm0 = vsmask.f32 (!%p138_p2), 7424 }
   0x6   : > { %141 = sbr.rel (%p138_p2) target bundleno = 319 (0x13f), region = 32  ;;  %v1052_v1 = vld [vmem:[%s1254_s1] sm:$0xff] (!%p138_p2)   ;;  %962 = vmatprep.subr.bf16.mxu0 (!%p138_p2), %v1051_v0  ;;  %v1054_v3 = vld [vmem:[%s1254_s1 + $0x8] sm:$0xff] (!%p138_p2)   ;;  %v1056_v5 = vld [vmem:[%s1254_s1 + $0x10] sm:$0xff] (!%p138_p2)   ;;  %vm603_vm1 = vcmask (!%p138_p2), 1044480   ;;  %vm761_vm3 = vcmask (!%p138_p2), 517120  }
   0x7   : > { %982 = vmatprep.subr.bf16.mxu1 (!%p138_p2), %v1052_v1  ;;  %963 = vmatpush3.bf16.msra.mxu0 (!%p138_p2), %v1051_v0  ;;  %v1057_v6 = vld [vmem:[%s1254_s1 + $0x58] sm:$0xff] (!%p138_p2)   ;;  %v1059_v8 = vld [vmem:[%s1254_s1 + $0x60] sm:$0xff] (!%p138_p2)   ;;  %v1061_v10 = vld [vmem:[%s1254_s1 + $0x68] sm:$0xff] (!%p138_p2)   ;;  %vm463_vm2 = vsmask.f32 (!%p138_p2), 5376  ;;  %vm758_vm4 = vcmask (!%p138_p2), 519168  }
   0x8   : > { %983 = vmatpush3.bf16.msra.mxu1 (!%p138_p2), %v1052_v1  ;;  %964 = vmatprep.subr.bf16.mxu0 (!%p138_p2), %v1053_v2  ;;  %v1058_v7 = vld [vmem:[%s1254_s1 + $0x18] sm:$0xff] (!%p138_p2)   ;;  %v1060_v9 = vld [vmem:[%s1254_s1 + $0x20] sm:$0xff] (!%p138_p2)   ;;  %v1062_v11 = vld [vmem:[%s1254_s1 + $0x28] sm:$0xff] (!%p138_p2)  }
   0x9   : > { %984 = vmatprep.subr.bf16.mxu1 (!%p138_p2), %v1054_v3  ;;  %v1063_v14 = vld [vmem:[%s1254_s1 + $0x70] sm:$0xff] (!%p138_p2)   ;;  %v1065_v22 = vld [vmem:[%s1254_s1 + $0x78] sm:$0xff] (!%p138_p2)   ;;  %v1070_v26 = vld [vmem:[%s1254_s1 + $0x80] sm:$0xff] (!%p138_p2)  }
   0xa   : > { %v1064_v15 = vld [vmem:[%s1254_s1 + $0x30] sm:$0xff] (!%p138_p2)   ;;  %v1066_v23 = vld [vmem:[%s1254_s1 + $0x38] sm:$0xff] (!%p138_p2)   ;;  %v1071_v28 = vld [vmem:[%s1254_s1 + $0xc0] sm:$0xff] (!%p138_p2)  }
   0xb   : > { %965 = vmatpush3.bf16.msra.mxu0 (!%p138_p2), %v1053_v2  ;;  %v1072_v30 = vld [vmem:[%s1254_s1 + $0x88] sm:$0xff] (!%p138_p2)   ;;  %v1074_v32 = vld [vmem:[%s1254_s1 + $0x90] sm:$0xff] (!%p138_p2)   ;;  %v1076_v45 = vld [vmem:[%s1254_s1 + $0x98] sm:$0xff] (!%p138_p2)  }
   0xc   : > { %985 = vmatpush3.bf16.msra.mxu1 (!%p138_p2), %v1054_v3  ;;  %966 = vmatprep.subr.bf16.mxu0 (!%p138_p2), %v1055_v4  ;;  %v1073_v31 = vld [vmem:[%s1254_s1 + $0xc8] sm:$0xff] (!%p138_p2)   ;;  %v1075_v37 = vld [vmem:[%s1254_s1 + $0xd0] sm:$0xff] (!%p138_p2)   ;;  %v1077_v50 = vld [vmem:[%s1254_s1 + $0xd8] sm:$0xff] (!%p138_p2)  }
   0xd   : > { %s1258_s13 = smov (!%p161_p3, %s818_s13), 1  ;;  %986 = vmatprep.subr.bf16.mxu1 %v1056_v5  ;;  %v1078_v55 = vld [vmem:[%s1254_s1 + $0xa0] sm:$0xff]   ;;  %v1080_v58 = vld [vmem:[%s1254_s1 + $0xa8] sm:$0xff]   ;;  %v1082_v60 = vld [vmem:[%s1254_s1 + $0xb0] sm:$0xff]  }
   0xe   : > { %s918_s30 = sshll.u32 %s1258_s13, 4  ;;  %v1079_v57 = vld [vmem:[%s1254_s1 + $0xe0] sm:$0xff]   ;;  %v1081_v59 = vld [vmem:[%s1254_s1 + $0xe8] sm:$0xff]   ;;  %v1083_v61 = vld [vmem:[%s1254_s1 + $0xf0] sm:$0xff]   ;;  %s1042_s7 = smul.u32 12, %s1258_s13 }
   0xf   : > { %967 = vmatpush3.bf16.msra.mxu0 %v1055_v4  ;;  %s1167_s10 = scalar_lea.vmem %s1253_s0, %s918_s30  ;;  %v1084_v62 = vld [vmem:[%s1254_s1 + $0xb8] sm:$0xff]  }
  0x10   : > { %987 = vmatpush3.bf16.msra.mxu1 %v1056_v5  ;;  %968 = vmatprep.subr.bf16.mxu0 %v1057_v6  ;;  %v1067_v12 = vld [vmem:[%s1167_s10] sm:$0xff]   ;;  %v1068_v13 = vld [vmem:[%s1167_s10 + $0x8] ss:$0 sps:$4 sm:$0x77]   ;;  %v1085_v63 = vld [vmem:[%s1254_s1 + $0xf8] sm:$0xff]   ;;  %s170_s11 = scalar_lea.vmem %s1256_s3, %s1042_s7 }
  0x11   : > { %988 = vmatprep.subr.bf16.mxu1 %v1058_v7  ;;  %v219_v16 = vshrl.u32 %v1067_v12, 16  ;;  %v221_v17 = vshll.u32 %v1067_v12, 16  ;;  %v226_v18 = vshll.u32 %v1068_v13, 16  ;;  %998 = vmatprep.mubr.bf16.mxu1 %v1067_v12  ;;  %v230_v25 = vshrl.u32 %v1068_v13, 16  ;;  %v432_v33 = vld [vmem:[%s1167_s10] sm:$0xc] }
  0x12   : > { %v1069_v27 = vld [vmem:[%s1167_s10 + $0x8] ss:$0 sps:$4 sm:$0x33]   ;;  %v433_v34 = vld [vmem:[%s1167_s10 + $0x4] sm:$0xf] }
  0x13   : > { %969 = vmatpush3.bf16.msra.mxu0 %v1057_v6  ;;  %v223_v19 = vrot.slane %v221_v17, 1  ;;  %v228_v20 = vrot.slane %v226_v18, 1  ;;  %v877_v35 = vcombine.low %v432_v33, %v433_v34  ;;  %v1087_v36 = vld [vmem:[%s1167_s10 + $0x8] sm:$0x1f]   ;;  %v582_v38 = vld [vmem:[%s1167_s10] sm:$0x8] }
  0x14   : > { %989 = vmatpush3.bf16.msra.mxu1 %v1058_v7  ;;  %970 = vmatprep.subr.bf16.mxu0 %v1059_v8  ;;  %v473_v41 = vshrl.u32 %v1087_v36, 16  ;;  %v476_v42 = vshll.u32 %v1087_v36, 16  ;;  %v903_v43 = vcombine.low %v582_v38, %v433_v34  ;;  %v605_v44 = vrot.slane %v1087_v36, 3 }
  0x15   : > { %990 = vmatprep.subr.bf16.mxu1 %v1060_v9  ;;  %v224_v21 = vor.u32 %v223_v19, %v219_v16  ;;  %v232_v29 = vor.u32 %v230_v25, %v228_v20  ;;  %v465_v39 = vshrl.u32 %v877_v35, 16  ;;  %v468_v40 = vshll.u32 %v877_v35, 16 }
  0x16   : > { %v475_v48 = vrot.slane %v473_v41, 2  ;;  %v478_v49 = vrot.slane %v476_v42, 3  ;;  %v604_v51 = vrot.slane %v903_v43, 3 }
  0x17   : > { %971 = vmatpush3.bf16.msra.mxu0 %v1059_v8  ;;  %v229_v24 = vsel %vm217_vm0, %v224_v21, %v228_v20  ;;  %v467_v46 = vrot.slane %v465_v39, 2  ;;  %v470_v47 = vrot.slane %v468_v40, 3 }
  0x18   : > { %991 = vmatpush3.bf16.msra.mxu1 %v1060_v9  ;;  %972 = vmatprep.subr.bf16.mxu0 %v1061_v10  ;;  %v479_v53 = vor.u32 %v478_v49, %v475_v48  ;;  %v606_v54 = vsel %vm603_vm1, %v604_v51, %v605_v44 }
  0x19   : > { %992 = vmatprep.subr.bf16.mxu1 %v1062_v11  ;;  %978 = vmatprep.mubr.bf16.mxu0 %v229_v24  ;;  %v471_v52 = vor.u32 %v470_v47, %v467_v46 }
  0x1b   : > { %973 = vmatpush3.bf16.msra.mxu0 %v1061_v10  ;;  %v480_v56 = vsel %vm463_vm2, %v471_v52, %v479_v53 }
  0x1c   : > { %993 = vmatpush3.bf16.msra.mxu1 %v1062_v11  ;;  %974 = vmatprep.subr.bf16.mxu0 %v1063_v14 }
  0x1d   : > { %994 = vmatprep.subr.bf16.mxu1 %v1064_v15 }
  0x1f   : > { %975 = vmatpush3.bf16.msra.mxu0 %v1063_v14 }
  0x20   : > { %995 = vmatpush3.bf16.msra.mxu1 %v1064_v15  ;;  %976 = vmatprep.subr.bf16.mxu0 %v1065_v22  ;;  %v912_v15 = vld [vmem:[%s1255_s2] ss:$0 sm:$0xff] }
  0x21   : > { %996 = vmatprep.subr.bf16.mxu1 %v1066_v23 }
  0x23   : > { %977 = vmatpush3.bf16.msra.mxu0 %v1065_v22 }
  0x24   : > { %997 = vmatpush3.bf16.msra.mxu1 %v1066_v23  ;;  %1002 = vmatprep.subr.bf16.mxu0 %v1070_v26 }
  0x25   : > { %1022 = vmatprep.subr.bf16.mxu1 %v1071_v28 }
  0x26   : > { %979 = vmatmul.mubr.bf16.vlgmr.msra.gmra.mrb[0].mxu0 %v232_v29 }
  0x27   : > { %999 = vmatmul.mubr.bf16.vlgmr.msra.gmra.mrb[0].mxu1 %v1069_v27  ;;  %1003 = vmatpush3.bf16.msra.mxu0 %v1070_v26 }
  0x28   : > { %1023 = vmatpush3.bf16.msra.mxu1 %v1071_v28  ;;  %1004 = vmatprep.subr.bf16.mxu0 %v1072_v30 }
  0x29   : > { %1024 = vmatprep.subr.bf16.mxu1 %v1073_v31  ;;  %1018 = vmatprep.mubr.bf16.mxu0 %v480_v56 }
  0x2a   : > { %1038 = vmatprep.mubr.bf16.mxu1 %v606_v54 }
  0x2b   : > { %1005 = vmatpush3.bf16.msra.mxu0 %v1072_v30 }
  0x2c   : > { %1025 = vmatpush3.bf16.msra.mxu1 %v1073_v31  ;;  %1006 = vmatprep.subr.bf16.mxu0 %v1074_v32 }
  0x2d   : > { %1026 = vmatprep.subr.bf16.mxu1 %v1075_v37 }
  0x2f   : > { %1007 = vmatpush3.bf16.msra.mxu0 %v1074_v32 }
  0x30   : > { %1027 = vmatpush3.bf16.msra.mxu1 %v1075_v37  ;;  %1008 = vmatprep.subr.bf16.mxu0 %v1076_v45 }
  0x31   : > { %1028 = vmatprep.subr.bf16.mxu1 %v1077_v50 }
  0x33   : > { %1009 = vmatpush3.bf16.msra.mxu0 %v1076_v45 }
  0x34   : > { %1029 = vmatpush3.bf16.msra.mxu1 %v1077_v50  ;;  %1010 = vmatprep.subr.bf16.mxu0 %v1078_v55 }
  0x35   : > { %1030 = vmatprep.subr.bf16.mxu1 %v1079_v57 }
  0x37   : > { %1011 = vmatpush3.bf16.msra.mxu0 %v1078_v55 }
  0x38   : > { %1031 = vmatpush3.bf16.msra.mxu1 %v1079_v57  ;;  %1012 = vmatprep.subr.bf16.mxu0 %v1080_v58 }
  0x39   : > { %1032 = vmatprep.subr.bf16.mxu1 %v1081_v59 }
  0x3b   : > { %1013 = vmatpush3.bf16.msra.mxu0 %v1080_v58 }
  0x3c   : > { %1033 = vmatpush3.bf16.msra.mxu1 %v1081_v59  ;;  %1014 = vmatprep.subr.bf16.mxu0 %v1082_v60 }
  0x3d   : > { %1034 = vmatprep.subr.bf16.mxu1 %v1083_v61 }
  0x3f   : > { %1015 = vmatpush3.bf16.msra.mxu0 %v1082_v60 }
  0x40   : > { %1035 = vmatpush3.bf16.msra.mxu1 %v1083_v61  ;;  %1016 = vmatprep.subr.bf16.mxu0 %v1084_v62 }
  0x41   : > { %1036 = vmatprep.subr.bf16.mxu1 %v1085_v63 }
  0x43   : > { %1017 = vmatpush3.bf16.msra.mxu0 %v1084_v62 }
  0x44   : > { %1037 = vmatpush3.bf16.msra.mxu1 %v1085_v63 }
  0x46   : > { %1019 = vmatmul.mubr.bf16.vlgmr.msra.gmra.mrb[4].mxu0 %v479_v53 }
  0x47   : > { %1039 = vmatmul.mubr.bf16.vlgmr.msra.gmra.mrb[4].mxu1 %v605_v44 }
  0xf9   : > { %v980_v0 = vpop.f32.mrb[0].mxu0 }
  0xfa   : > { %v1000_v1 = vpop.f32.mrb[0].mxu1  ;;  %v317_v2 = vpop.f32.mrb[1].mxu0 }
  0xfb   : > { %v427_v3 = vadd.f32 %v1000_v1, %v980_v0  ;;  %v418_v4 = vpop.f32.mrb[1].mxu1  ;;  %v981_v5 = vpop.f32.mrb[2].mxu0 }
  0xfc   : > { %v419_v6 = vadd.f32 %v418_v4, %v317_v2  ;;  %v1001_v7 = vpop.f32.mrb[2].mxu1  ;;  %v320_v8 = vpop.f32.mrb[3].mxu0 }
  0xfd   : > { %v421_v9 = vpop.f32.mrb[3].mxu1 }
  0xfe   : > { %v422_v10 = vadd.f32 %v421_v9, %v320_v8 }
 0x119   : > { %v1020_v11 = vpop.f32.mrb[4].mxu0 }
 0x11a   : > { %v581_v12 = vadd.f32 %v1020_v11, %v427_v3  ;;  %v1040_v13 = vpop.f32.mrb[4].mxu1  ;;  %v565_v14 = vpop.f32.mrb[5].mxu0 }
 0x11b   : > { %v579_v16 = vadd.f32 %v565_v14, %v419_v6  ;;  %v691_v17 = vpop.f32.mrb[5].mxu1  ;;  %v1021_v18 = vpop.f32.mrb[6].mxu0 }
 0x11c   : > { %v707_v19 = vadd.f32 %v1040_v13, %v581_v12  ;;  %v1041_v20 = vpop.f32.mrb[6].mxu1  ;;  %v568_v21 = vpop.f32.mrb[7].mxu0 }
 0x11d   : > { %v705_v22 = vadd.f32 %v691_v17, %v579_v16  ;;  %v580_v23 = vadd.f32 %v568_v21, %v422_v10  ;;  %v694_v24 = vpop.f32.mrb[7].mxu1 }
 0x11e   : > { %v717_v25 = vadd.f32 %v912_v15, %v707_v19 }
 0x11f   : > { %v715_v26 = vadd.f32 %v912_v15, %v705_v22  ;;  %v706_v27 = vadd.f32 %v694_v24, %v580_v23 }
 0x120   : > { %v723_v28 = vmul.f32 0.044715, %v717_v25  ;;  %v720_v46 = vmul.f32 0.5, %v717_v25 }
 0x121   : > { %v721_v29 = vmul.f32 0.044715, %v715_v26  ;;  %v716_v30 = vadd.f32 %v912_v15, %v706_v27  ;;  %v718_v48 = vmul.f32 0.5, %v715_v26 }
 0x122   : > { %v726_v31 = vmul.f32 %v723_v28, %v717_v25 }
 0x123   : > { %v724_v32 = vmul.f32 %v721_v29, %v715_v26  ;;  %v722_v33 = vmul.f32 0.044715, %v716_v30  ;;  %v719_v53 = vmul.f32 0.5, %v716_v30 }
 0x124   : > { %v729_v34 = vmul.f32 %v726_v31, %v717_v25 }
 0x125   : > { %v727_v35 = vmul.f32 %v724_v32, %v715_v26  ;;  %v725_v36 = vmul.f32 %v722_v33, %v716_v30 }
 0x126   : > { %v732_v37 = vadd.f32 %v729_v34, %v717_v25 }
 0x127   : > { %v730_v38 = vadd.f32 %v727_v35, %v715_v26  ;;  %v728_v39 = vmul.f32 %v725_v36, %v716_v30 }
 0x128   : > { %v735_v40 = vmul.f32 0.7978846, %v732_v37 }
 0x129   : > { %v733_v41 = vmul.f32 0.7978846, %v730_v38  ;;  %v731_v42 = vadd.f32 %v728_v39, %v716_v30 }
 0x12a   : > { %1089 = vtanh.f32 %v735_v40 }
 0x12b   : > { %1091 = vtanh.f32 %v733_v41  ;;  %v734_v43 = vmul.f32 0.7978846, %v731_v42 }
 0x12d   : > { %1093 = vtanh.f32 %v734_v43 }
 0x134   : > { %v1090_v44 = vpop.eup %1089 }
 0x135   : > { %v1092_v45 = vpop.eup %1091  ;;  %v741_v47 = vadd.f32 1.0, %v1090_v44 }
 0x136   : > { %v739_v49 = vadd.f32 1.0, %v1092_v45 }
 0x137   : > { %v1094_v50 = vpop.eup %1093  ;;  %v744_v51 = vmul.f32 %v741_v47, %v720_v46 }
 0x138   : > { %v742_v52 = vmul.f32 %v739_v49, %v718_v48  ;;  %v740_v54 = vadd.f32 1.0, %v1094_v50 }
 0x139   : > { %v921_v55 = vpack.c.bf16 %v744_v51, %v744_v51 }
 0x13a   : > { %v919_v56 = vpack.c.bf16 %v742_v52, %v742_v52  ;;  %v743_v57 = vmul.f32 %v740_v54, %v719_v53 }
 0x13b   : > { %762 = vst.msk [vmem:[%s170_s11 + $0x8] sm:$0x3] %vm761_vm3, %v921_v55 }
 0x13c   : > { %759 = vst.msk [vmem:[%s170_s11] sm:$0xf] %vm758_vm4, %v919_v56  ;;  %v920_v58 = vpack.c.bf16 %v743_v57, %v743_v57 }
 0x13e   : > { %760 = vst.msk [vmem:[%s170_s11 + $0x4] sm:$0xf] %vm758_vm4, %v920_v58 }
 0x13f PF: > { %s13_s12 = sadd.s32 1, %s1101_s12  }
 0x140   : > { %p10_p4 = scmp.ge.s32.totalorder %s13_s12, 4  }
 0x142   :  { %12 = sbr.rel (!%p10_p4) target bundleno = 1 (0x1), region = 65 }

// kernel: encoder_forward.5
= control target key start
LH: loop header
LB: loop body
LE: loop exit
PB: predicated region body
PF: predicated region fallthrough
CT: control target
= control target key end

     0   :  { %s1173_s0 = inlined_call_operand.vmem [shape: bf16[32,64], index: 0, kind: input, shape index: {}]   ;;  %s1174_s1 = inlined_call_operand.vmem [shape: bf16[4,64,64], index: 1, kind: input, shape index: {}]   ;;  %s1175_s2 = inlined_call_operand.vmem [shape: f32[4,1,64], index: 2, kind: input, shape index: {}]   ;;  %s1176_s3 = inlined_call_operand.vmem [shape: bf16[64,128], index: 3, kind: input, shape index: {}]   ;;  %s1177_s4 = inlined_call_operand.vmem [shape: f32[1,128], index: 4, kind: input, shape index: {}]   ;;  %s1178_s5 = inlined_call_operand.hbm [shape: f32[32,128], index: 5, kind: output, shape index: {}]  }
   0x1   :  { %v889_v0 = vld [vmem:[%s1174_s1] sm:$0xff]   ;;  %v890_v1 = vld [vmem:[%s1174_s1 + $0x8] sm:$0xff]   ;;  %v891_v2 = vld [vmem:[%s1174_s1 + $0x10] sm:$0xff]  }
   0x2   :  { %826 = vmatprep.subr.bf16.mxu0 %v889_v0  ;;  %v788_v3 = vld [vmem:[%s1173_s0] sm:$0xff]   ;;  %v795_v4 = vld [vmem:[%s1173_s0 + $0x8] sm:$0xff]   ;;  %v892_v11 = vld [vmem:[%s1174_s1 + $0x18] sm:$0xff]  }
   0x3   :  { %827 = vmatpush3.bf16.msra.mxu0 %v889_v0  ;;  %v1021_v5 = vunpack.c.l.bf16 %v788_v3  ;;  %v1023_v6 = vunpack.c.h.bf16 %v788_v3  ;;  %v1025_v7 = vunpack.c.l.bf16 %v795_v4  ;;  %v1027_v8 = vunpack.c.h.bf16 %v795_v4 }
   0x4   :  { %828 = vmatprep.subr.bf16.mxu0 %v890_v1 }
   0x5   :  { %v34_v9 = vmul.f32 0.044715, %v1021_v5  ;;  %v35_v10 = vmul.f32 0.044715, %v1023_v6  ;;  %v36_v12 = vmul.f32 0.044715, %v1025_v7 }
   0x6   :  { %v37_v13 = vmul.f32 0.044715, %v1027_v8 }
   0x7   :  { %829 = vmatpush3.bf16.msra.mxu0 %v890_v1  ;;  %v38_v14 = vmul.f32 %v1021_v5, %v34_v9  ;;  %v39_v15 = vmul.f32 %v1023_v6, %v35_v10  ;;  %v40_v16 = vmul.f32 %v1025_v7, %v36_v12 }
   0x8   :  { %830 = vmatprep.subr.bf16.mxu0 %v891_v2  ;;  %v41_v17 = vmul.f32 %v1027_v8, %v37_v13 }
   0x9   :  { %v42_v18 = vmul.f32 %v1021_v5, %v38_v14  ;;  %v43_v19 = vmul.f32 %v1023_v6, %v39_v15  ;;  %v44_v20 = vmul.f32 %v1025_v7, %v40_v16 }
   0xa   :  { %v45_v21 = vmul.f32 %v1027_v8, %v41_v17 }
   0xb   :  { %831 = vmatpush3.bf16.msra.mxu0 %v891_v2  ;;  %v46_v22 = vadd.f32 %v1021_v5, %v42_v18  ;;  %v47_v23 = vadd.f32 %v1023_v6, %v43_v19  ;;  %v48_v24 = vadd.f32 %v1025_v7, %v44_v20 }
   0xc   :  { %832 = vmatprep.subr.bf16.mxu0 %v892_v11  ;;  %v49_v25 = vadd.f32 %v1027_v8, %v45_v21 }
   0xd   :  { %v50_v26 = vmul.f32 0.7978846, %v46_v22  ;;  %v51_v27 = vmul.f32 0.7978846, %v47_v23  ;;  %v52_v28 = vmul.f32 0.7978846, %v48_v24 }
   0xe   :  { %v53_v29 = vmul.f32 0.7978846, %v49_v25 }
   0xf   :  { %833 = vmatpush3.bf16.msra.mxu0 %v892_v11  ;;  %909 = vtanh.f32 %v50_v26 }
  0x10   :  { %911 = vtanh.f32 %v51_v27 }
  0x11   :  { %10 = vsyncpa [#allocation3], 0  ;;  %913 = vtanh.f32 %v52_v28  ;;  %v30_v30 = vmul.f32 0.5, %v1021_v5  ;;  %v31_v32 = vmul.f32 0.5, %v1023_v6  ;;  %v32_v35 = vmul.f32 0.5, %v1025_v7  ;;  %v893_v48 = vld [vmem:[%s1174_s1 + $0x20] sm:$0xff]  }
  0x12   :  { %915 = vtanh.f32 %v53_v29  ;;  %v33_v38 = vmul.f32 0.5, %v1027_v8  ;;  %vm107_vm0 = vcmask 523264   ;;  %v894_v49 = vld [vmem:[%s1174_s1 + $0x28] sm:$0xff]   ;;  %838 = vmatprep.subr.bf16.mxu1 %v893_v48  ;;  %v895_v50 = vld [vmem:[%s1174_s1 + $0x30] sm:$0xff]   ;;  %v896_v51 = vld [vmem:[%s1174_s1 + $0x38] sm:$0xff]   ;;  %s973_s17 = smov [#allocation2]  }
  0x13   :  { %839 = vmatpush3.bf16.msra.mxu1 %v893_v48  ;;  %v725_v52 = vld [vmem:[%s1175_s2] ss:$0 sm:$0xff]  ;;  %s714_s18 = sshll.u32 %s973_s17, 4  ;;  %s715_s18 = int_to_ptr.vmem [resolvable:$true] %s714_s18 }
  0x14   :  { %840 = vmatprep.subr.bf16.mxu1 %v894_v49  ;;  %s949_s19 = scalar_lea.vmem %s715_s18, 512  ;;  %p954_p1 = scmp.lt.s32.totalorder %s715_s18, %s715_s18 }
  0x15   :  { %p950_p0 = scmp.ne.s32.totalorder %s715_s18, %s949_s19  ;;  %p955_p2 = scmp.lt.s32.totalorder %s949_s19, %s949_s19 }
  0x17   :  { %841 = vmatpush3.bf16.msra.mxu1 %v894_v49  ;;  %p956_p3 = por %p955_p2, %p954_p1 }
  0x18   :  { %842 = vmatprep.subr.bf16.mxu1 %v895_v50 }
  0x19   :  { %v910_v31 = vpop.eup %909  ;;  %p957_p4 = pnand %p956_p3, %p950_p0 }
  0x1a   :  { %v912_v33 = vpop.eup %911  ;;  %v58_v34 = vadd.f32 1.0, %v910_v31 }
  0x1b   :  { %v914_v36 = vpop.eup %913  ;;  %v59_v37 = vadd.f32 1.0, %v912_v33  ;;  %843 = vmatpush3.bf16.msra.mxu1 %v895_v50 }
  0x1c   :  { %v916_v39 = vpop.eup %915  ;;  %v62_v40 = vmul.f32 %v58_v34, %v30_v30  ;;  %v60_v41 = vadd.f32 1.0, %v914_v36  ;;  %844 = vmatprep.subr.bf16.mxu1 %v896_v51 }
  0x1d   :  { %v63_v42 = vmul.f32 %v59_v37, %v31_v32  ;;  %v61_v43 = vadd.f32 1.0, %v916_v39  ;;  %v897_v39 = vld [vmem:[%s1174_s1 + $0x40] sm:$0xff]  }
  0x1e   :  { %v64_v44 = vmul.f32 %v60_v41, %v32_v35  ;;  %850 = vmatprep.subr.bf16.mxu0 %v897_v39  ;;  %v899_v41 = vld [vmem:[%s1174_s1 + $0x50] sm:$0xff]  }
  0x1f   :  { %v66_v45 = vpack.c.bf16 %v63_v42, %v62_v40  ;;  %v65_v46 = vmul.f32 %v61_v43, %v33_v38  ;;  %845 = vmatpush3.bf16.msra.mxu1 %v896_v51  ;;  %v898_v40 = vld [vmem:[%s1174_s1 + $0x48] sm:$0xff]   ;;  %v900_v42 = vld [vmem:[%s1174_s1 + $0x58] sm:$0xff]   ;;  %v741_v43 = vld [vmem:[%s1175_s2 + $0x1] ss:$0 sm:$0xff] }
  0x21   :  { %834 = vmatprep.mubr.msk.bf16.mxu0 %vm107_vm0, %v66_v45  ;;  %v67_v47 = vpack.c.bf16 %v65_v46, %v64_v44 }
  0x23   :  { %835 = vmatmul.mubr.msk.bf16.vlgmr.msra.gmra.mrb[0].mxu0 %vm107_vm0, %v67_v47 }
  0x24   :  { %851 = vmatpush3.bf16.msra.mxu0 %v897_v39 }
  0x25   :  { %852 = vmatprep.subr.bf16.mxu0 %v898_v40 }
  0x28   :  { %853 = vmatpush3.bf16.msra.mxu0 %v898_v40 }
  0x29   :  { %854 = vmatprep.subr.bf16.mxu0 %v899_v41 }
  0x2c   :  { %855 = vmatpush3.bf16.msra.mxu0 %v899_v41 }
  0x2d   :  { %856 = vmatprep.subr.bf16.mxu0 %v900_v42 }
  0x30   :  { %857 = vmatpush3.bf16.msra.mxu0 %v900_v42 }
  0xf6   :  { %v836_v53 = vpop.f32.mrb[0].mxu0 }
  0xf7   :  { %v157_v54 = vadd.f32 %v836_v53, %v725_v52  ;;  %v148_v55 = vpop.f32.mrb[1].mxu0 }
  0xf8   :  { %v149_v56 = vadd.f32 %v725_v52, %v148_v55  ;;  %v837_v57 = vpop.f32.mrb[2].mxu0 }
  0xf9   :  { %v169_v58 = vmul.f32 0.044715, %v157_v54  ;;  %v160_v59 = vadd.f32 %v837_v57, %v725_v52  ;;  %v151_v60 = vpop.f32.mrb[3].mxu0  ;;  %v165_v27 = vmul.f32 0.5, %v157_v54 }
  0xfa   :  { %v167_v61 = vmul.f32 0.044715, %v149_v56  ;;  %v152_v62 = vadd.f32 %v725_v52, %v151_v60  ;;  %v163_v30 = vmul.f32 0.5, %v149_v56 }
  0xfb   :  { %v173_v63 = vmul.f32 %v169_v58, %v157_v54  ;;  %v170_v0 = vmul.f32 0.044715, %v160_v59  ;;  %v166_v28 = vmul.f32 0.5, %v160_v59 }
  0xfc   :  { %v171_v1 = vmul.f32 %v167_v61, %v149_v56  ;;  %v168_v2 = vmul.f32 0.044715, %v152_v62  ;;  %v164_v31 = vmul.f32 0.5, %v152_v62 }
  0xfd   :  { %v177_v3 = vmul.f32 %v173_v63, %v157_v54  ;;  %v174_v4 = vmul.f32 %v170_v0, %v160_v59 }
  0xfe   :  { %v172_v9 = vmul.f32 %v168_v2, %v152_v62  ;;  %v175_v10 = vmul.f32 %v171_v1, %v149_v56 }
  0xff   :  { %v181_v11 = vadd.f32 %v177_v3, %v157_v54  ;;  %v178_v12 = vmul.f32 %v174_v4, %v160_v59 }
 0x100   :  { %v176_v13 = vmul.f32 %v172_v9, %v152_v62  ;;  %v179_v14 = vadd.f32 %v175_v10, %v149_v56 }
 0x101   :  { %v185_v15 = vmul.f32 0.7978846, %v181_v11  ;;  %v182_v16 = vadd.f32 %v178_v12, %v160_v59 }
 0x102   :  { %v180_v17 = vadd.f32 %v176_v13, %v152_v62  ;;  %v183_v18 = vmul.f32 0.7978846, %v179_v14 }
 0x103   :  { %917 = vtanh.f32 %v185_v15  ;;  %v186_v19 = vmul.f32 0.7978846, %v182_v16 }
 0x104   :  { %v184_v20 = vmul.f32 0.7978846, %v180_v17  ;;  %919 = vtanh.f32 %v183_v18 }
 0x105   :  { %921 = vtanh.f32 %v186_v19 }
 0x106   :  { %923 = vtanh.f32 %v184_v20 }
 0x10d   :  { %v918_v21 = vpop.eup %917 }
 0x10e   :  { %v920_v22 = vpop.eup %919  ;;  %v193_v23 = vadd.f32 1.0, %v918_v21 }
 0x10f   :  { %v922_v24 = vpop.eup %921  ;;  %v191_v25 = vadd.f32 1.0, %v920_v22 }
 0x110   :  { %v924_v26 = vpop.eup %923  ;;  %v194_v29 = vadd.f32 1.0, %v922_v24  ;;  %v197_v33 = vmul.f32 %v193_v23, %v165_v27 }
 0x111   :  { %v192_v32 = vadd.f32 1.0, %v924_v26  ;;  %v195_v35 = vmul.f32 %v191_v25, %v163_v30  ;;  %v901_v30 = vld [vmem:[%s1174_s1 + $0x60] sm:$0xff]  }
 0x112   :  { %v198_v34 = vmul.f32 %v194_v29, %v166_v28  ;;  %862 = vmatprep.subr.bf16.mxu1 %v901_v30 }
 0x113   :  { %v196_v36 = vmul.f32 %v192_v32, %v164_v31  ;;  %v902_v31 = vld [vmem:[%s1174_s1 + $0x68] sm:$0xff]   ;;  %v903_v32 = vld [vmem:[%s1174_s1 + $0x70] sm:$0xff]  }
 0x114   :  { %v200_v37 = vpack.c.bf16 %v198_v34, %v197_v33  ;;  %v904_v33 = vld [vmem:[%s1174_s1 + $0x78] sm:$0xff]   ;;  %v757_v34 = vld [vmem:[%s1175_s2 + $0x2] ss:$0 sm:$0xff] }
 0x115   :  { %v199_v38 = vpack.c.bf16 %v196_v36, %v195_v35 }
 0x117   :  { %846 = vmatprep.mubr.msk.bf16.mxu1 %vm107_vm0, %v199_v38 }
 0x118   :  { %847 = vmatmul.mubr.msk.bf16.vlgmr.msra.gmra.mrb[0].mxu1 %vm107_vm0, %v200_v37 }
 0x119   :  { %863 = vmatpush3.bf16.msra.mxu1 %v901_v30 }
 0x11a   :  { %864 = vmatprep.subr.bf16.mxu1 %v902_v31 }
 0x11d   :  { %865 = vmatpush3.bf16.msra.mxu1 %v902_v31 }
 0x11e   :  { %866 = vmatprep.subr.bf16.mxu1 %v903_v32 }
 0x121   :  { %867 = vmatpush3.bf16.msra.mxu1 %v903_v32 }
 0x122   :  { %868 = vmatprep.subr.bf16.mxu1 %v904_v33 }
 0x125   :  { %869 = vmatpush3.bf16.msra.mxu1 %v904_v33 }
 0x1eb   :  { %v848_v44 = vpop.f32.mrb[0].mxu1 }
 0x1ec   :  { %v291_v45 = vadd.f32 %v848_v44, %v741_v43  ;;  %v282_v46 = vpop.f32.mrb[1].mxu1 }
 0x1ed   :  { %v283_v47 = vadd.f32 %v741_v43, %v282_v46  ;;  %v849_v48 = vpop.f32.mrb[2].mxu1 }
 0x1ee   :  { %v1087_v49 = vadd.f32 %v1025_v7, %v291_v45  ;;  %v294_v50 = vadd.f32 %v849_v48, %v741_v43  ;;  %v285_v51 = vpop.f32.mrb[3].mxu1 }
 0x1ef   :  { %v1090_v52 = vadd.f32 %v1021_v5, %v283_v47  ;;  %v286_v53 = vadd.f32 %v741_v43, %v285_v51 }
 0x1f0   :  { %v307_v54 = vmul.f32 0.044715, %v1087_v49  ;;  %v1094_v55 = vadd.f32 %v1027_v8, %v294_v50  ;;  %v303_v23 = vmul.f32 0.5, %v1087_v49 }
 0x1f1   :  { %v305_v56 = vmul.f32 0.044715, %v1090_v52  ;;  %v1098_v57 = vadd.f32 %v1023_v6, %v286_v53  ;;  %v301_v20 = vmul.f32 0.5, %v1090_v52 }
 0x1f2   :  { %v311_v58 = vmul.f32 %v307_v54, %v1087_v49  ;;  %v308_v7 = vmul.f32 0.044715, %v1094_v55  ;;  %v304_v17 = vmul.f32 0.5, %v1094_v55 }
 0x1f3   :  { %v306_v59 = vmul.f32 0.044715, %v1098_v57  ;;  %v309_v5 = vmul.f32 %v305_v56, %v1090_v52  ;;  %v302_v21 = vmul.f32 0.5, %v1098_v57 }
 0x1f4   :  { %v315_v60 = vmul.f32 %v311_v58, %v1087_v49  ;;  %v312_v61 = vmul.f32 %v308_v7, %v1094_v55 }
 0x1f5   :  { %v310_v8 = vmul.f32 %v306_v59, %v1098_v57  ;;  %v313_v62 = vmul.f32 %v309_v5, %v1090_v52 }
 0x1f6   :  { %v316_v63 = vmul.f32 %v312_v61, %v1094_v55  ;;  %v319_v6 = vadd.f32 %v315_v60, %v1087_v49 }
 0x1f7   :  { %v314_v0 = vmul.f32 %v310_v8, %v1098_v57  ;;  %v317_v1 = vadd.f32 %v313_v62, %v1090_v52 }
 0x1f8   :  { %v320_v2 = vadd.f32 %v316_v63, %v1094_v55  ;;  %v323_v3 = vmul.f32 0.7978846, %v319_v6 }
 0x1f9   :  { %v318_v4 = vadd.f32 %v314_v0, %v1098_v57  ;;  %v321_v9 = vmul.f32 0.7978846, %v317_v1 }
 0x1fa   :  { %v324_v10 = vmul.f32 0.7978846, %v320_v2  ;;  %925 = vtanh.f32 %v323_v3 }
 0x1fb   :  { %v322_v11 = vmul.f32 0.7978846, %v318_v4  ;;  %927 = vtanh.f32 %v321_v9 }
 0x1fc   :  { %929 = vtanh.f32 %v324_v10 }
 0x1fd   :  { %931 = vtanh.f32 %v322_v11 }
 0x204   :  { %v926_v12 = vpop.eup %925 }
 0x205   :  { %v928_v13 = vpop.eup %927  ;;  %v331_v18 = vadd.f32 1.0, %v926_v12 }
 0x206   :  { %v930_v14 = vpop.eup %929  ;;  %v329_v15 = vadd.f32 1.0, %v928_v13 }
 0x207   :  { %v932_v16 = vpop.eup %931  ;;  %v332_v19 = vadd.f32 1.0, %v930_v14  ;;  %v335_v27 = vmul.f32 %v331_v18, %v303_v23  ;;  %v907_v23 = vld [vmem:[%s1176_s3 + $0x10] sm:$0xff]  }
 0x208   :  { %v330_v22 = vadd.f32 1.0, %v932_v16  ;;  %v333_v25 = vmul.f32 %v329_v15, %v301_v20 }
 0x209   :  { %v336_v24 = vmul.f32 %v332_v19, %v304_v17 }
 0x20a   :  { %v334_v26 = vmul.f32 %v330_v22, %v302_v21  ;;  %v905_v21 = vld [vmem:[%s1176_s3] sm:$0xff]   ;;  %v906_v22 = vld [vmem:[%s1176_s3 + $0x8] sm:$0xff]  }
 0x20b   :  { %v338_v29 = vpack.c.bf16 %v336_v24, %v335_v27  ;;  %874 = vmatprep.subr.bf16.mxu0 %v905_v21  ;;  %v908_v24 = vld [vmem:[%s1176_s3 + $0x18] sm:$0xff]  }
 0x20c   :  { %v337_v28 = vpack.c.bf16 %v334_v26, %v333_v25  ;;  %v773_v25 = vld [vmem:[%s1175_s2 + $0x3] ss:$0 sm:$0xff] }
 0x20e   :  { %858 = vmatprep.mubr.msk.bf16.mxu0 %vm107_vm0, %v337_v28 }
 0x20f   :  { %859 = vmatmul.mubr.msk.bf16.vlgmr.msra.gmra.mrb[4].mxu0 %vm107_vm0, %v338_v29 }
 0x210   :  { %875 = vmatpush3.bf16.msra.mxu0 %v905_v21 }
 0x211   :  { %876 = vmatprep.subr.bf16.mxu0 %v906_v22 }
 0x214   :  { %877 = vmatpush3.bf16.msra.mxu0 %v906_v22 }
 0x215   :  { %878 = vmatprep.subr.bf16.mxu0 %v907_v23 }
 0x218   :  { %879 = vmatpush3.bf16.msra.mxu0 %v907_v23 }
 0x219   :  { %880 = vmatprep.subr.bf16.mxu0 %v908_v24 }
 0x21c   :  { %881 = vmatpush3.bf16.msra.mxu0 %v908_v24 }
 0x2e2   :  { %v860_v35 = vpop.f32.mrb[4].mxu0 }
 0x2e3   :  { %v429_v36 = vadd.f32 %v860_v35, %v757_v34  ;;  %v420_v37 = vpop.f32.mrb[5].mxu0 }
 0x2e4   :  { %v421_v38 = vadd.f32 %v757_v34, %v420_v37  ;;  %v861_v39 = vpop.f32.mrb[6].mxu0 }
 0x2e5   :  { %v441_v40 = vmul.f32 0.044715, %v429_v36  ;;  %v432_v41 = vadd.f32 %v861_v39, %v757_v34  ;;  %v423_v42 = vpop.f32.mrb[7].mxu0  ;;  %v437_v9 = vmul.f32 0.5, %v429_v36 }
 0x2e6   :  { %v439_v43 = vmul.f32 0.044715, %v421_v38  ;;  %v424_v44 = vadd.f32 %v757_v34, %v423_v42  ;;  %v435_v12 = vmul.f32 0.5, %v421_v38 }
 0x2e7   :  { %v445_v45 = vmul.f32 %v441_v40, %v429_v36  ;;  %v442_v46 = vmul.f32 0.044715, %v432_v41  ;;  %v438_v10 = vmul.f32 0.5, %v432_v41 }
 0x2e8   :  { %v443_v47 = vmul.f32 %v439_v43, %v421_v38  ;;  %v440_v48 = vmul.f32 0.044715, %v424_v44  ;;  %v436_v13 = vmul.f32 0.5, %v424_v44 }
 0x2e9   :  { %v449_v50 = vmul.f32 %v445_v45, %v429_v36  ;;  %v446_v51 = vmul.f32 %v442_v46, %v432_v41 }
 0x2ea   :  { %v447_v53 = vmul.f32 %v443_v47, %v421_v38  ;;  %v444_v54 = vmul.f32 %v440_v48, %v424_v44 }
 0x2eb   :  { %v453_v56 = vadd.f32 %v449_v50, %v429_v36  ;;  %v450_v58 = vmul.f32 %v446_v51, %v432_v41 }
 0x2ec   :  { %v451_v7 = vadd.f32 %v447_v53, %v421_v38  ;;  %v448_v59 = vmul.f32 %v444_v54, %v424_v44 }
 0x2ed   :  { %v457_v5 = vmul.f32 0.7978846, %v453_v56  ;;  %v454_v60 = vadd.f32 %v450_v58, %v432_v41 }
 0x2ee   :  { %v455_v61 = vmul.f32 0.7978846, %v451_v7  ;;  %v452_v8 = vadd.f32 %v448_v59, %v424_v44 }
 0x2ef   :  { %933 = vtanh.f32 %v457_v5  ;;  %v458_v62 = vmul.f32 0.7978846, %v454_v60 }
 0x2f0   :  { %935 = vtanh.f32 %v455_v61  ;;  %v456_v63 = vmul.f32 0.7978846, %v452_v8 }
 0x2f1   :  { %937 = vtanh.f32 %v458_v62 }
 0x2f2   :  { %939 = vtanh.f32 %v456_v63 }
 0x2f9   :  { %v934_v6 = vpop.eup %933 }
 0x2fa   :  { %v936_v0 = vpop.eup %935  ;;  %v465_v1 = vadd.f32 1.0, %v934_v6 }
 0x2fb   :  { %v938_v2 = vpop.eup %937  ;;  %v463_v3 = vadd.f32 1.0, %v936_v0 }
 0x2fc   :  { %v940_v4 = vpop.eup %939  ;;  %v466_v11 = vadd.f32 1.0, %v938_v2  ;;  %v469_v15 = vmul.f32 %v465_v1, %v437_v9 }
 0x2fd   :  { %v464_v14 = vadd.f32 1.0, %v940_v4  ;;  %v467_v17 = vmul.f32 %v463_v3, %v435_v12  ;;  %v780_v12 = vld [vmem:[%s1177_s4] ss:$0 sm:$0xff] }
 0x2fe   :  { %v470_v16 = vmul.f32 %v466_v11, %v438_v10 }
 0x2ff   :  { %v468_v18 = vmul.f32 %v464_v14, %v436_v13 }
 0x300   :  { %v472_v19 = vpack.c.bf16 %v470_v16, %v469_v15 }
 0x301   :  { %v471_v20 = vpack.c.bf16 %v468_v18, %v467_v17 }
 0x303   :  { %870 = vmatprep.mubr.msk.bf16.mxu1 %vm107_vm0, %v471_v20 }
 0x304   :  { %871 = vmatmul.mubr.msk.bf16.vlgmr.msra.gmra.mrb[4].mxu1 %vm107_vm0, %v472_v19 }
 0x3d7   :  { %v872_v26 = vpop.f32.mrb[4].mxu1 }
 0x3d8   :  { %v563_v27 = vadd.f32 %v872_v26, %v773_v25  ;;  %v554_v28 = vpop.f32.mrb[5].mxu1 }
 0x3d9   :  { %v555_v29 = vadd.f32 %v773_v25, %v554_v28  ;;  %v873_v30 = vpop.f32.mrb[6].mxu1 }
 0x3da   :  { %v571_v31 = vadd.f32 %v563_v27, %v1087_v49  ;;  %v566_v32 = vadd.f32 %v873_v30, %v773_v25  ;;  %v557_v33 = vpop.f32.mrb[7].mxu1 }
 0x3db   :  { %v569_v34 = vadd.f32 %v555_v29, %v1090_v52  ;;  %v558_v35 = vadd.f32 %v773_v25, %v557_v33 }
 0x3dc   :  { %v579_v36 = vmul.f32 0.044715, %v571_v31  ;;  %v572_v37 = vadd.f32 %v566_v32, %v1094_v55  ;;  %v575_v8 = vmul.f32 0.5, %v571_v31 }
 0x3dd   :  { %v577_v38 = vmul.f32 0.044715, %v569_v34  ;;  %v570_v39 = vadd.f32 %v558_v35, %v1098_v57  ;;  %v573_v6 = vmul.f32 0.5, %v569_v34 }
 0x3de   :  { %v583_v40 = vmul.f32 %v579_v36, %v571_v31  ;;  %v580_v41 = vmul.f32 0.044715, %v572_v37  ;;  %v576_v62 = vmul.f32 0.5, %v572_v37 }
 0x3df   :  { %v581_v42 = vmul.f32 %v577_v38, %v569_v34  ;;  %v578_v43 = vmul.f32 0.044715, %v570_v39  ;;  %v574_v0 = vmul.f32 0.5, %v570_v39 }
 0x3e0   :  { %v587_v44 = vmul.f32 %v583_v40, %v571_v31  ;;  %v584_v45 = vmul.f32 %v580_v41, %v572_v37 }
 0x3e1   :  { %v585_v46 = vmul.f32 %v581_v42, %v569_v34  ;;  %v582_v47 = vmul.f32 %v578_v43, %v570_v39 }
 0x3e2   :  { %v591_v49 = vadd.f32 %v587_v44, %v571_v31  ;;  %v588_v48 = vmul.f32 %v584_v45, %v572_v37 }
 0x3e3   :  { %v589_v50 = vadd.f32 %v585_v46, %v569_v34  ;;  %v586_v51 = vmul.f32 %v582_v47, %v570_v39 }
 0x3e4   :  { %v595_v52 = vmul.f32 0.7978846, %v591_v49  ;;  %v592_v53 = vadd.f32 %v588_v48, %v572_v37 }
 0x3e5   :  { %v590_v54 = vadd.f32 %v586_v51, %v570_v39  ;;  %v593_v56 = vmul.f32 0.7978846, %v589_v50 }
 0x3e6   :  { %941 = vtanh.f32 %v595_v52  ;;  %v596_v55 = vmul.f32 0.7978846, %v592_v53 }
 0x3e7   :  { %v594_v58 = vmul.f32 0.7978846, %v590_v54  ;;  %943 = vtanh.f32 %v593_v56 }
 0x3e8   :  { %945 = vtanh.f32 %v596_v55 }
 0x3e9   :  { %947 = vtanh.f32 %v594_v58 }
 0x3f0   :  { %v942_v57 = vpop.eup %941 }
 0x3f1   :  { %v944_v7 = vpop.eup %943  ;;  %v603_v59 = vadd.f32 1.0, %v942_v57 }
 0x3f2   :  { %v946_v5 = vpop.eup %945  ;;  %v601_v60 = vadd.f32 1.0, %v944_v7 }
 0x3f3   :  { %v948_v61 = vpop.eup %947  ;;  %v604_v63 = vadd.f32 1.0, %v946_v5  ;;  %v607_v2 = vmul.f32 %v603_v59, %v575_v8 }
 0x3f4   :  { %v602_v1 = vadd.f32 1.0, %v948_v61  ;;  %v605_v4 = vmul.f32 %v601_v60, %v573_v6 }
 0x3f5   :  { %v608_v3 = vmul.f32 %v604_v63, %v576_v62 }
 0x3f6   :  { %v606_v9 = vmul.f32 %v602_v1, %v574_v0 }
 0x3f7   :  { %v610_v10 = vpack.c.bf16 %v608_v3, %v607_v2 }
 0x3f8   :  { %v609_v11 = vpack.c.bf16 %v606_v9, %v605_v4 }
 0x3fa   :  { %882 = vmatprep.mubr.msk.bf16.mxu0 %vm107_vm0, %v609_v11 }
 0x3fb   :  { %883 = vmatmul.mubr.msk.bf16.vlgmr.msra.gmra.mrb[8].mxu0 %vm107_vm0, %v610_v10 }
 0x4ce   :  { %v884_v13 = vpop.f32.mrb[8].mxu0 }
 0x4cf   :  { %v699_v14 = vadd.f32 %v884_v13, %v780_v12  ;;  %v690_v15 = vpop.f32.mrb[9].mxu0 }
 0x4d0   :  { %v691_v16 = vadd.f32 %v780_v12, %v690_v15  ;;  %v885_v17 = vpop.f32.mrb[10].mxu0 }
 0x4d1   :  { %707 = vst [vmem:[#allocation2 + $0x10] sm:$0xff] %v699_v14  ;;  %v702_v18 = vadd.f32 %v885_v17, %v780_v12  ;;  %v693_v19 = vpop.f32.mrb[11].mxu0 }
 0x4d2   :  { %705 = vst [vmem:[#allocation2] sm:$0xff] %v691_v16  ;;  %v694_v20 = vadd.f32 %v780_v12, %v693_v19 }
 0x4d3   :  { %708 = vst [vmem:[#allocation2 + $0x18] sm:$0xff] %v702_v18 }
 0x4d4   :  { %706 = vst [vmem:[#allocation2 + $0x8] sm:$0xff] %v694_v20 }
 0x4d5   :  { %960 = shalt.err (!%p957_p4)
}
 0x4d6   :  { %s961_s21 = scalar_lea.hbm %s1178_s5, 512 }
 0x4d7   :  { %p962_p5 = scmp.ne.s32.totalorder %s1178_s5, %s961_s21  ;;  %p965_p6 = scmp.lt.u32.totalorder %s961_s21, %s1178_s5 }
 0x4d9   :  { %p967_p7 = pnand %p965_p6, %p962_p5 }
 0x4db   :  { %970 = shalt.err (!%p967_p7)
}
 0x4dc   :  { %s974_s26 = smov 128   ;;  %s975_s27 = smov 8  }
 0x4dd   :  { %720 = dma.vmem_to_hbm [thread:$0]  %s715_s18, 512, %s1178_s5, [#allocation3], %s974_s26, %s974_s26, %s975_s27  }
 0x4de   :  { %971 = dma.done.wait [#allocation3], 512  }
 0x4df   :  { %972 = vsyncadd [#allocation3], 4294966784 }
 0x4e0   :  { %724 = vsyncpa [#allocation3], 1 }

</bundles_post_ra>
